<compile_context>
chip_gen: v7x
topology: tpu7x:2x2x1
jax: 0.10.0
libtpu: 0.0.40
codegen_flags: <defaults>
</compile_context>

<pallas_src>
import jax
import jax.numpy as jnp
from jax.experimental import pallas as pl
from jax.experimental.pallas import tpu as pltpu

# ----------------------------- static shapes ------------------------------ #
H = W = 16                       # scaled-down spatial size (module implies 224)
C_IN = 3
C_PAD = 8                        # channels zero-padded to 8 for lane-dense rows
C_OUT = 32
HP, WP = H // 2, W // 2          # 8, 8 (after 2x2 max pool)
FEAT = C_OUT * HP * WP           # 2048 classifier inputs
HIDDEN = 64
HIDDEN_PAD = 128                 # hidden dim zero-padded to a full lane tile
N_CLS = 1
OUT_PAD = 128                    # lane-dense final store width

ROW_LANES = 256                  # (W+2)*C_PAD = 144, padded to 2 lane tiles
POOL_N = WP * C_OUT              # 256 lanes: pooled column wp*32 + co
CONV_ROWS = H                    # conv output rows per image

B_MAX = 64                       # images per grid step (VMEM-safe on v5e/v7x)
B_ALIGN = 16                     # bf16 sublane tile -> clean (16,B)->16B reshape


def _round_up(x, m):
    return (x + m - 1) // m * m


# ------------------------------ fused kernel ------------------------------ #

def vgg1_fused_kernel(x_ref, kc_ref, bc_ref, w1_ref, b1_ref, w2_ref, b2_ref,
                      o_ref):
    """Full VGG1Block forward for one batch tile of `bt` images.

    x_ref : (H+2, bt, 256) bf16   padded images; lane = p*8 + c (p = padded x)
    kc_ref: (2, 3, 256, 256) bf16 conv weights; [parity, dy, p*8+c, wp*32+co]
    bc_ref: (1, 256) f32          conv bias tiled over wp blocks
    w1_ref: (HP, 256, 128) bf16   fc1 weights in [hp, wp*32+co, j] layout
    b1_ref: (1, 128) f32          fc1 bias (zero-padded 64->128)
    w2_ref: (1, 128) f32          fc2 weight row (zero-padded)
    b2_ref: (1, 1) f32            fc2 bias
    o_ref : (bt, 128) f32         sigmoid output broadcast across 128 lanes
    """
    bt = x_ref.shape[1]

    # ---- conv lhs slabs: rows h+dy for all images, fully lane dense -------
    lhs = [x_ref[dy:dy + H].reshape(H * bt, ROW_LANES) for dy in range(3)]

    # ---- 3x3 conv as 6 bf16 MXU matmuls (per dy, per output-column parity) -
    def conv_cols(parity):
        acc = jnp.dot(lhs[0], kc_ref[parity, 0],
                      preferred_element_type=jnp.float32)
        for dy in (1, 2):
            acc = acc + jnp.dot(lhs[dy], kc_ref[parity, dy],
                                preferred_element_type=jnp.float32)
        return acc                                  # (H*bt, 256) f32

    # ---- 2x2 max pool: even/odd columns first, then row pairs -------------
    pw = jnp.maximum(conv_cols(0), conv_cols(1))    # pooled over w
    a4 = pw.reshape(HP, 2, bt, POOL_N)
    pooled = jnp.maximum(a4[:, 0], a4[:, 1])        # (HP, bt, 256) pooled over h

    # conv bias + ReLU after pooling (bias is per-co, ReLU/max are monotonic)
    feat = jnp.maximum(pooled + bc_ref[...], 0.0)
    featb = feat.astype(jnp.bfloat16)

    # ---- FC1: 8 accumulated (bt,256)@(256,128) bf16 matmuls -> ReLU --------
    h = jnp.dot(featb[0], w1_ref[0], preferred_element_type=jnp.float32)
    for hp in range(1, HP):
        h = h + jnp.dot(featb[hp], w1_ref[hp],
                        preferred_element_type=jnp.float32)
    h = jnp.maximum(h + b1_ref[...], 0.0)           # (bt, 128)

    # ---- FC2 as VPU multiply + lane reduction, overflow-safe sigmoid ------
    logit = jnp.sum(h * w2_ref[...], axis=-1, keepdims=True) + b2_ref[...]
    e = jnp.exp(-jnp.abs(logit))
    sig = jnp.where(logit >= 0, 1.0 / (1.0 + e), e / (1.0 + e))
    o_ref[...] = jnp.broadcast_to(sig, (bt, OUT_PAD)).astype(o_ref.dtype)


# ------------------------- wrapper-side preparation ------------------------ #

def _prep_input(x_nchw, n_pad):
    """(N,3,H,W) f32 -> (H+2, n_pad, 256) bf16, lane = p*8 + c, zero padded."""
    n = x_nchw.shape[0]
    x = jnp.transpose(x_nchw, (0, 2, 3, 1))                       # (N,H,W,3)
    x = jnp.pad(x, ((0, n_pad - n), (0, 0), (1, 1), (0, C_PAD - C_IN)))
    x = x.reshape(n_pad, H, (W + 2) * C_PAD)                      # (N,16,144)
    x = jnp.pad(x, ((0, 0), (1, 1), (0, ROW_LANES - (W + 2) * C_PAD)))
    return jnp.transpose(x, (1, 0, 2)).astype(jnp.bfloat16)       # (18,N,256)


def _prep_params(conv_w, conv_b, fc1_w, fc1_b, fc2_w, fc2_b):
    """One-time (XLA, under jit) weight re-layout for the kernel."""
    # Conv: kc[parity, dy, p*8+c, wp*32+co] = conv_w[co, c, dy, (2wp+parity+dx)-... ]
    w_hwio = jnp.transpose(conv_w, (2, 3, 1, 0))                  # (dy,dx,ci,co)
    w_hwio = jnp.pad(w_hwio, ((0, 0), (0, 0), (0, C_PAD - C_IN), (0, 0)))
    eyes = [jnp.eye(W, W + 2, k=dx, dtype=jnp.float32) for dx in range(3)]
    p_even = jnp.stack([e[0::2] for e in eyes])                   # (3, 8, 18)
    p_odd = jnp.stack([e[1::2] for e in eyes])                    # (3, 8, 18)
    kc = []
    for p_sel in (p_even, p_odd):
        k = jnp.einsum('xwp,yxco->ypcwo', p_sel, w_hwio)          # (3,18,8,8,32)
        k = k.reshape(3, (W + 2) * C_PAD, POOL_N)                 # (3,144,256)
        k = jnp.pad(k, ((0, 0), (0, ROW_LANES - (W + 2) * C_PAD), (0, 0)))
        kc.append(k)
    kc = jnp.stack(kc).astype(jnp.bfloat16)                       # (2,3,256,256)
    bc = jnp.tile(conv_b, (WP,)).reshape(1, POOL_N).astype(jnp.float32)

    # FC1: torch flatten order is (co, hp, wp) -> kernel layout [hp, wp*32+co, j]
    w1 = fc1_w.reshape(HIDDEN, C_OUT, HP, WP)
    w1 = jnp.transpose(w1, (2, 3, 1, 0))                          # (hp,wp,co,j)
    w1 = w1.reshape(HP, POOL_N, HIDDEN)
    w1 = jnp.pad(w1, ((0, 0), (0, 0), (0, HIDDEN_PAD - HIDDEN)))
    w1 = w1.astype(jnp.bfloat16)                                  # (8,256,128)
    b1 = jnp.pad(fc1_b, (0, HIDDEN_PAD - HIDDEN)).reshape(1, HIDDEN_PAD)
    w2 = jnp.pad(fc2_w, ((0, 0), (0, HIDDEN_PAD - HIDDEN))).astype(jnp.float32)
    b2 = fc2_b.reshape(1, N_CLS).astype(jnp.float32)
    return kc, bc, w1, b1.astype(jnp.float32), w2, b2


# -------------------------------- wrapper ---------------------------------- #

@jax.jit
def vgg1block_forward(x_nchw, conv_w, conv_b, fc1_w, fc1_b, fc2_w, fc2_b):
    n = x_nchw.shape[0]
    bt = min(B_MAX, _round_up(n, B_ALIGN))           # images per grid step
    n_pad = _round_up(n, bt)

    xp = _prep_input(x_nchw, n_pad)
    kc, bc, w1, b1, w2, b2 = _prep_params(conv_w, conv_b, fc1_w, fc1_b,
                                          fc2_w, fc2_b)

    out_wide = pl.pallas_call(
        vgg1_fused_kernel,
        out_shape=jax.ShapeDtypeStruct((n_pad, OUT_PAD), jnp.float32),
        grid=(n_pad // bt,),
        in_specs=[
            pl.BlockSpec((H + 2, bt, ROW_LANES), lambda i: (0, i, 0)),
            pl.BlockSpec((2, 3, ROW_LANES, POOL_N), lambda i: (0, 0, 0, 0)),
            pl.BlockSpec((1, POOL_N), lambda i: (0, 0)),
            pl.BlockSpec((HP, POOL_N, HIDDEN_PAD), lambda i: (0, 0, 0)),
            pl.BlockSpec((1, HIDDEN_PAD), lambda i: (0, 0)),
            pl.BlockSpec((1, HIDDEN_PAD), lambda i: (0, 0)),
            pl.BlockSpec((1, N_CLS), lambda i: (0, 0)),
        ],
        out_specs=pl.BlockSpec((bt, OUT_PAD), lambda i: (i, 0)),
        compiler_params=pltpu.CompilerParams(
            dimension_semantics=("parallel",),
            vmem_limit_bytes=32 * 1024 * 1024),
    )(xp, kc, bc, w1, b1, w2, b2)

    return out_wide[:n, :N_CLS]                                   # (N, 1)


# --------------------------- plain-JAX reference --------------------------- #

@jax.jit
def reference_forward(x_nchw, conv_w, conv_b, fc1_w, fc1_b, fc2_w, fc2_b):
    y = jax.lax.conv_general_dilated(
        x_nchw, conv_w, window_strides=(1, 1), padding=((1, 1), (1, 1)),
        dimension_numbers=("NCHW", "OIHW", "NCHW"))
    y = jax.nn.relu(y + conv_b[None, :, None, None])
    y = jax.lax.reduce_window(y, -jnp.inf, jax.lax.max,
                              (1, 1, 2, 2), (1, 1, 2, 2), "VALID")
    xf = y.reshape(y.shape[0], -1)
    h = jax.nn.relu(xf @ fc1_w.T + fc1_b)
    return jax.nn.sigmoid(h @ fc2_w.T + fc2_b)


# ----------------------------------- main ---------------------------------- #

if __name__ == "__main__":
    key = jax.random.PRNGKey(0)
    ks = jax.random.split(key, 7)
    # deterministic synthetic parameters in PyTorch layouts
    conv_w = jax.random.normal(ks[1], (C_OUT, C_IN, 3, 3), jnp.float32) * 0.1
    conv_b = jax.random.normal(ks[2], (C_OUT,), jnp.float32) * 0.1
    fc1_w = jax.random.normal(ks[3], (HIDDEN, FEAT), jnp.float32) * 0.02
    fc1_b = jax.random.normal(ks[4], (HIDDEN,), jnp.float32) * 0.02
    fc2_w = jax.random.normal(ks[5], (N_CLS, HIDDEN), jnp.float32) * 0.1
    fc2_b = jax.random.normal(ks[6], (N_CLS,), jnp.float32) * 0.1

    # Primary small-shape check (batch=2) plus a multi-tile check (batch=80,
    # exercises grid>1 and batch-tile padding).  bf16 matmuls -> ~1e-3 error,
    # checked with a comfortably wider tolerance.
    for n in (2, 80):
        x = jax.random.normal(jax.random.fold_in(ks[0], n),
                              (n, C_IN, H, W), jnp.float32)        # NCHW
        out = jax.block_until_ready(
            vgg1block_forward(x, conv_w, conv_b, fc1_w, fc1_b, fc2_w, fc2_b))
        ref = reference_forward(x, conv_w, conv_b, fc1_w, fc1_b, fc2_w, fc2_b)
        assert out.shape == (n, 1), out.shape
        assert jnp.allclose(out, ref, atol=2e-2, rtol=2e-2), (
            n, float(jnp.max(jnp.abs(out - ref))))

    print("KERNEL_OK")
</pallas_src>

<mosaic_0001>
module attributes {stable_mosaic.version = 11 : i64} {
  func.func @vgg1_fused_kernel(%arg0: i32, %arg1: memref<18x16x256xbf16, #tpu.memory_space<vmem>>, %arg2: memref<2x3x256x256xbf16, #tpu.memory_space<vmem>>, %arg3: memref<1x256xf32, #tpu.memory_space<vmem>>, %arg4: memref<8x256x128xbf16, #tpu.memory_space<vmem>>, %arg5: memref<1x128xf32, #tpu.memory_space<vmem>>, %arg6: memref<1x128xf32, #tpu.memory_space<vmem>>, %arg7: memref<1x1xf32, #tpu.memory_space<vmem>>, %arg8: memref<16x128xf32, #tpu.memory_space<vmem>>) attributes {dimension_semantics = [#tpu.dimension_semantics<parallel>], iteration_bounds = array<i64: 1>, scalar_prefetch = 0 : i64, scratch_operands = 0 : i64, tpu.core_type = #tpu.core_type<tc>, window_params = [{transform_indices = @transform_0, window_bounds = array<i64: 18, 16, 256>}, {pipeline_mode = #tpu.pipeline_mode<synchronous>, transform_indices = @transform_1, window_bounds = array<i64: 2, 3, 256, 256>}, {pipeline_mode = #tpu.pipeline_mode<synchronous>, transform_indices = @transform_2, window_bounds = array<i64: 1, 256>}, {pipeline_mode = #tpu.pipeline_mode<synchronous>, transform_indices = @transform_3, window_bounds = array<i64: 8, 256, 128>}, {pipeline_mode = #tpu.pipeline_mode<synchronous>, transform_indices = @transform_4, window_bounds = array<i64: 1, 128>}, {pipeline_mode = #tpu.pipeline_mode<synchronous>, transform_indices = @transform_5, window_bounds = array<i64: 1, 128>}, {pipeline_mode = #tpu.pipeline_mode<synchronous>, transform_indices = @transform_6, window_bounds = array<i64: 1, 1>}, {transform_indices = @transform_7, window_bounds = array<i64: 16, 128>}]} {
    %c0 = arith.constant 0 : index
    %c0_0 = arith.constant 0 : index
    %c0_1 = arith.constant 0 : index
    %0 = vector.load %arg1[%c0, %c0_0, %c0_1] : memref<18x16x256xbf16, #tpu.memory_space<vmem>>, vector<16x16x256xbf16>
    %1 = vector.shape_cast %0 : vector<16x16x256xbf16> to vector<256x256xbf16>
    %c1 = arith.constant 1 : index
    %c0_2 = arith.constant 0 : index
    %c0_3 = arith.constant 0 : index
    %2 = vector.load %arg1[%c1, %c0_2, %c0_3] : memref<18x16x256xbf16, #tpu.memory_space<vmem>>, vector<16x16x256xbf16>
    %3 = vector.shape_cast %2 : vector<16x16x256xbf16> to vector<256x256xbf16>
    %c2 = arith.constant 2 : index
    %c0_4 = arith.constant 0 : index
    %c0_5 = arith.constant 0 : index
    %4 = vector.load %arg1[%c2, %c0_4, %c0_5] : memref<18x16x256xbf16, #tpu.memory_space<vmem>>, vector<16x16x256xbf16>
    %5 = vector.shape_cast %4 : vector<16x16x256xbf16> to vector<256x256xbf16>
    %c0_6 = arith.constant 0 : index
    %c0_7 = arith.constant 0 : index
    %c0_8 = arith.constant 0 : index
    %c0_9 = arith.constant 0 : index
    %6 = vector.load %arg2[%c0_6, %c0_7, %c0_8, %c0_9] : memref<2x3x256x256xbf16, #tpu.memory_space<vmem>>, vector<1x1x256x256xbf16>
    %7 = vector.shape_cast %6 : vector<1x1x256x256xbf16> to vector<256x256xbf16>
    %cst = arith.constant dense<0.000000e+00> : vector<256x256xf32>
    %8 = tpu.matmul %1, %7, %cst {dimension_numbers = #tpu.dot_dimension_numbers<[1], [0], [0], [1], [0, 0, 1, 1], [], []>} : vector<256x256xbf16>, vector<256x256xbf16>, vector<256x256xf32> -> vector<256x256xf32>
    %c0_10 = arith.constant 0 : index
    %c1_11 = arith.constant 1 : index
    %c0_12 = arith.constant 0 : index
    %c0_13 = arith.constant 0 : index
    %9 = vector.load %arg2[%c0_10, %c1_11, %c0_12, %c0_13] : memref<2x3x256x256xbf16, #tpu.memory_space<vmem>>, vector<1x1x256x256xbf16>
    %10 = vector.shape_cast %9 : vector<1x1x256x256xbf16> to vector<256x256xbf16>
    %cst_14 = arith.constant dense<0.000000e+00> : vector<256x256xf32>
    %11 = tpu.matmul %3, %10, %cst_14 {dimension_numbers = #tpu.dot_dimension_numbers<[1], [0], [0], [1], [0, 0, 1, 1], [], []>} : vector<256x256xbf16>, vector<256x256xbf16>, vector<256x256xf32> -> vector<256x256xf32>
    %12 = arith.addf %8, %11 : vector<256x256xf32>
    %c0_15 = arith.constant 0 : index
    %c2_16 = arith.constant 2 : index
    %c0_17 = arith.constant 0 : index
    %c0_18 = arith.constant 0 : index
    %13 = vector.load %arg2[%c0_15, %c2_16, %c0_17, %c0_18] : memref<2x3x256x256xbf16, #tpu.memory_space<vmem>>, vector<1x1x256x256xbf16>
    %14 = vector.shape_cast %13 : vector<1x1x256x256xbf16> to vector<256x256xbf16>
    %cst_19 = arith.constant dense<0.000000e+00> : vector<256x256xf32>
    %15 = tpu.matmul %5, %14, %cst_19 {dimension_numbers = #tpu.dot_dimension_numbers<[1], [0], [0], [1], [0, 0, 1, 1], [], []>} : vector<256x256xbf16>, vector<256x256xbf16>, vector<256x256xf32> -> vector<256x256xf32>
    %16 = arith.addf %12, %15 : vector<256x256xf32>
    %c1_20 = arith.constant 1 : index
    %c0_21 = arith.constant 0 : index
    %c0_22 = arith.constant 0 : index
    %c0_23 = arith.constant 0 : index
    %17 = vector.load %arg2[%c1_20, %c0_21, %c0_22, %c0_23] : memref<2x3x256x256xbf16, #tpu.memory_space<vmem>>, vector<1x1x256x256xbf16>
    %18 = vector.shape_cast %17 : vector<1x1x256x256xbf16> to vector<256x256xbf16>
    %cst_24 = arith.constant dense<0.000000e+00> : vector<256x256xf32>
    %19 = tpu.matmul %1, %18, %cst_24 {dimension_numbers = #tpu.dot_dimension_numbers<[1], [0], [0], [1], [0, 0, 1, 1], [], []>} : vector<256x256xbf16>, vector<256x256xbf16>, vector<256x256xf32> -> vector<256x256xf32>
    %c1_25 = arith.constant 1 : index
    %c1_26 = arith.constant 1 : index
    %c0_27 = arith.constant 0 : index
    %c0_28 = arith.constant 0 : index
    %20 = vector.load %arg2[%c1_25, %c1_26, %c0_27, %c0_28] : memref<2x3x256x256xbf16, #tpu.memory_space<vmem>>, vector<1x1x256x256xbf16>
    %21 = vector.shape_cast %20 : vector<1x1x256x256xbf16> to vector<256x256xbf16>
    %cst_29 = arith.constant dense<0.000000e+00> : vector<256x256xf32>
    %22 = tpu.matmul %3, %21, %cst_29 {dimension_numbers = #tpu.dot_dimension_numbers<[1], [0], [0], [1], [0, 0, 1, 1], [], []>} : vector<256x256xbf16>, vector<256x256xbf16>, vector<256x256xf32> -> vector<256x256xf32>
    %23 = arith.addf %19, %22 : vector<256x256xf32>
    %c1_30 = arith.constant 1 : index
    %c2_31 = arith.constant 2 : index
    %c0_32 = arith.constant 0 : index
    %c0_33 = arith.constant 0 : index
    %24 = vector.load %arg2[%c1_30, %c2_31, %c0_32, %c0_33] : memref<2x3x256x256xbf16, #tpu.memory_space<vmem>>, vector<1x1x256x256xbf16>
    %25 = vector.shape_cast %24 : vector<1x1x256x256xbf16> to vector<256x256xbf16>
    %cst_34 = arith.constant dense<0.000000e+00> : vector<256x256xf32>
    %26 = tpu.matmul %5, %25, %cst_34 {dimension_numbers = #tpu.dot_dimension_numbers<[1], [0], [0], [1], [0, 0, 1, 1], [], []>} : vector<256x256xbf16>, vector<256x256xbf16>, vector<256x256xf32> -> vector<256x256xf32>
    %27 = arith.addf %23, %26 : vector<256x256xf32>
    %28 = arith.maximumf %16, %27 : vector<256x256xf32>
    %29 = vector.shape_cast %28 : vector<256x256xf32> to vector<8x2x16x256xf32>
    %30 = vector.extract_strided_slice %29 {offsets = [0, 0, 0, 0], sizes = [8, 1, 16, 256], strides = [1, 1, 1, 1]} : vector<8x2x16x256xf32> to vector<8x1x16x256xf32>
    %31 = vector.shape_cast %30 : vector<8x1x16x256xf32> to vector<8x16x256xf32>
    %32 = vector.extract_strided_slice %29 {offsets = [0, 1, 0, 0], sizes = [8, 1, 16, 256], strides = [1, 1, 1, 1]} : vector<8x2x16x256xf32> to vector<8x1x16x256xf32>
    %33 = vector.shape_cast %32 : vector<8x1x16x256xf32> to vector<8x16x256xf32>
    %34 = arith.maximumf %31, %33 : vector<8x16x256xf32>
    %c0_35 = arith.constant 0 : index
    %c0_36 = arith.constant 0 : index
    %35 = vector.load %arg3[%c0_35, %c0_36] : memref<1x256xf32, #tpu.memory_space<vmem>>, vector<1x256xf32>
    %36 = vector.shape_cast %35 : vector<1x256xf32> to vector<1x1x256xf32>
    %37 = vector.broadcast %36 : vector<1x1x256xf32> to vector<8x16x256xf32>
    %38 = arith.addf %34, %37 : vector<8x16x256xf32>
    %cst_37 = arith.constant 0.000000e+00 : f32
    %39 = vector.broadcast %cst_37 : f32 to vector<8x16x256xf32>
    %40 = arith.maximumf %38, %39 : vector<8x16x256xf32>
    %41 = arith.truncf %40 : vector<8x16x256xf32> to vector<8x16x256xbf16>
    %42 = vector.extract_strided_slice %41 {offsets = [0, 0, 0], sizes = [1, 16, 256], strides = [1, 1, 1]} : vector<8x16x256xbf16> to vector<1x16x256xbf16>
    %43 = vector.shape_cast %42 : vector<1x16x256xbf16> to vector<16x256xbf16>
    %c0_38 = arith.constant 0 : index
    %c0_39 = arith.constant 0 : index
    %c0_40 = arith.constant 0 : index
    %44 = vector.load %arg4[%c0_38, %c0_39, %c0_40] : memref<8x256x128xbf16, #tpu.memory_space<vmem>>, vector<1x256x128xbf16>
    %45 = vector.shape_cast %44 : vector<1x256x128xbf16> to vector<256x128xbf16>
    %cst_41 = arith.constant dense<0.000000e+00> : vector<16x128xf32>
    %46 = tpu.matmul %43, %45, %cst_41 {dimension_numbers = #tpu.dot_dimension_numbers<[1], [0], [0], [1], [0, 0, 1, 1], [], []>} : vector<16x256xbf16>, vector<256x128xbf16>, vector<16x128xf32> -> vector<16x128xf32>
    %47 = vector.extract_strided_slice %41 {offsets = [1, 0, 0], sizes = [1, 16, 256], strides = [1, 1, 1]} : vector<8x16x256xbf16> to vector<1x16x256xbf16>
    %48 = vector.shape_cast %47 : vector<1x16x256xbf16> to vector<16x256xbf16>
    %c1_42 = arith.constant 1 : index
    %c0_43 = arith.constant 0 : index
    %c0_44 = arith.constant 0 : index
    %49 = vector.load %arg4[%c1_42, %c0_43, %c0_44] : memref<8x256x128xbf16, #tpu.memory_space<vmem>>, vector<1x256x128xbf16>
    %50 = vector.shape_cast %49 : vector<1x256x128xbf16> to vector<256x128xbf16>
    %cst_45 = arith.constant dense<0.000000e+00> : vector<16x128xf32>
    %51 = tpu.matmul %48, %50, %cst_45 {dimension_numbers = #tpu.dot_dimension_numbers<[1], [0], [0], [1], [0, 0, 1, 1], [], []>} : vector<16x256xbf16>, vector<256x128xbf16>, vector<16x128xf32> -> vector<16x128xf32>
    %52 = arith.addf %46, %51 : vector<16x128xf32>
    %53 = vector.extract_strided_slice %41 {offsets = [2, 0, 0], sizes = [1, 16, 256], strides = [1, 1, 1]} : vector<8x16x256xbf16> to vector<1x16x256xbf16>
    %54 = vector.shape_cast %53 : vector<1x16x256xbf16> to vector<16x256xbf16>
    %c2_46 = arith.constant 2 : index
    %c0_47 = arith.constant 0 : index
    %c0_48 = arith.constant 0 : index
    %55 = vector.load %arg4[%c2_46, %c0_47, %c0_48] : memref<8x256x128xbf16, #tpu.memory_space<vmem>>, vector<1x256x128xbf16>
    %56 = vector.shape_cast %55 : vector<1x256x128xbf16> to vector<256x128xbf16>
    %cst_49 = arith.constant dense<0.000000e+00> : vector<16x128xf32>
    %57 = tpu.matmul %54, %56, %cst_49 {dimension_numbers = #tpu.dot_dimension_numbers<[1], [0], [0], [1], [0, 0, 1, 1], [], []>} : vector<16x256xbf16>, vector<256x128xbf16>, vector<16x128xf32> -> vector<16x128xf32>
    %58 = arith.addf %52, %57 : vector<16x128xf32>
    %59 = vector.extract_strided_slice %41 {offsets = [3, 0, 0], sizes = [1, 16, 256], strides = [1, 1, 1]} : vector<8x16x256xbf16> to vector<1x16x256xbf16>
    %60 = vector.shape_cast %59 : vector<1x16x256xbf16> to vector<16x256xbf16>
    %c3 = arith.constant 3 : index
    %c0_50 = arith.constant 0 : index
    %c0_51 = arith.constant 0 : index
    %61 = vector.load %arg4[%c3, %c0_50, %c0_51] : memref<8x256x128xbf16, #tpu.memory_space<vmem>>, vector<1x256x128xbf16>
    %62 = vector.shape_cast %61 : vector<1x256x128xbf16> to vector<256x128xbf16>
    %cst_52 = arith.constant dense<0.000000e+00> : vector<16x128xf32>
    %63 = tpu.matmul %60, %62, %cst_52 {dimension_numbers = #tpu.dot_dimension_numbers<[1], [0], [0], [1], [0, 0, 1, 1], [], []>} : vector<16x256xbf16>, vector<256x128xbf16>, vector<16x128xf32> -> vector<16x128xf32>
    %64 = arith.addf %58, %63 : vector<16x128xf32>
    %65 = vector.extract_strided_slice %41 {offsets = [4, 0, 0], sizes = [1, 16, 256], strides = [1, 1, 1]} : vector<8x16x256xbf16> to vector<1x16x256xbf16>
    %66 = vector.shape_cast %65 : vector<1x16x256xbf16> to vector<16x256xbf16>
    %c4 = arith.constant 4 : index
    %c0_53 = arith.constant 0 : index
    %c0_54 = arith.constant 0 : index
    %67 = vector.load %arg4[%c4, %c0_53, %c0_54] : memref<8x256x128xbf16, #tpu.memory_space<vmem>>, vector<1x256x128xbf16>
    %68 = vector.shape_cast %67 : vector<1x256x128xbf16> to vector<256x128xbf16>
    %cst_55 = arith.constant dense<0.000000e+00> : vector<16x128xf32>
    %69 = tpu.matmul %66, %68, %cst_55 {dimension_numbers = #tpu.dot_dimension_numbers<[1], [0], [0], [1], [0, 0, 1, 1], [], []>} : vector<16x256xbf16>, vector<256x128xbf16>, vector<16x128xf32> -> vector<16x128xf32>
    %70 = arith.addf %64, %69 : vector<16x128xf32>
    %71 = vector.extract_strided_slice %41 {offsets = [5, 0, 0], sizes = [1, 16, 256], strides = [1, 1, 1]} : vector<8x16x256xbf16> to vector<1x16x256xbf16>
    %72 = vector.shape_cast %71 : vector<1x16x256xbf16> to vector<16x256xbf16>
    %c5 = arith.constant 5 : index
    %c0_56 = arith.constant 0 : index
    %c0_57 = arith.constant 0 : index
    %73 = vector.load %arg4[%c5, %c0_56, %c0_57] : memref<8x256x128xbf16, #tpu.memory_space<vmem>>, vector<1x256x128xbf16>
    %74 = vector.shape_cast %73 : vector<1x256x128xbf16> to vector<256x128xbf16>
    %cst_58 = arith.constant dense<0.000000e+00> : vector<16x128xf32>
    %75 = tpu.matmul %72, %74, %cst_58 {dimension_numbers = #tpu.dot_dimension_numbers<[1], [0], [0], [1], [0, 0, 1, 1], [], []>} : vector<16x256xbf16>, vector<256x128xbf16>, vector<16x128xf32> -> vector<16x128xf32>
    %76 = arith.addf %70, %75 : vector<16x128xf32>
    %77 = vector.extract_strided_slice %41 {offsets = [6, 0, 0], sizes = [1, 16, 256], strides = [1, 1, 1]} : vector<8x16x256xbf16> to vector<1x16x256xbf16>
    %78 = vector.shape_cast %77 : vector<1x16x256xbf16> to vector<16x256xbf16>
    %c6 = arith.constant 6 : index
    %c0_59 = arith.constant 0 : index
    %c0_60 = arith.constant 0 : index
    %79 = vector.load %arg4[%c6, %c0_59, %c0_60] : memref<8x256x128xbf16, #tpu.memory_space<vmem>>, vector<1x256x128xbf16>
    %80 = vector.shape_cast %79 : vector<1x256x128xbf16> to vector<256x128xbf16>
    %cst_61 = arith.constant dense<0.000000e+00> : vector<16x128xf32>
    %81 = tpu.matmul %78, %80, %cst_61 {dimension_numbers = #tpu.dot_dimension_numbers<[1], [0], [0], [1], [0, 0, 1, 1], [], []>} : vector<16x256xbf16>, vector<256x128xbf16>, vector<16x128xf32> -> vector<16x128xf32>
    %82 = arith.addf %76, %81 : vector<16x128xf32>
    %83 = vector.extract_strided_slice %41 {offsets = [7, 0, 0], sizes = [1, 16, 256], strides = [1, 1, 1]} : vector<8x16x256xbf16> to vector<1x16x256xbf16>
    %84 = vector.shape_cast %83 : vector<1x16x256xbf16> to vector<16x256xbf16>
    %c7 = arith.constant 7 : index
    %c0_62 = arith.constant 0 : index
    %c0_63 = arith.constant 0 : index
    %85 = vector.load %arg4[%c7, %c0_62, %c0_63] : memref<8x256x128xbf16, #tpu.memory_space<vmem>>, vector<1x256x128xbf16>
    %86 = vector.shape_cast %85 : vector<1x256x128xbf16> to vector<256x128xbf16>
    %cst_64 = arith.constant dense<0.000000e+00> : vector<16x128xf32>
    %87 = tpu.matmul %84, %86, %cst_64 {dimension_numbers = #tpu.dot_dimension_numbers<[1], [0], [0], [1], [0, 0, 1, 1], [], []>} : vector<16x256xbf16>, vector<256x128xbf16>, vector<16x128xf32> -> vector<16x128xf32>
    %88 = arith.addf %82, %87 : vector<16x128xf32>
    %c0_65 = arith.constant 0 : index
    %c0_66 = arith.constant 0 : index
    %89 = vector.load %arg5[%c0_65, %c0_66] : memref<1x128xf32, #tpu.memory_space<vmem>>, vector<1x128xf32>
    %90 = vector.broadcast %89 : vector<1x128xf32> to vector<16x128xf32>
    %91 = arith.addf %88, %90 : vector<16x128xf32>
    %cst_67 = arith.constant 0.000000e+00 : f32
    %92 = vector.broadcast %cst_67 : f32 to vector<16x128xf32>
    %93 = arith.maximumf %91, %92 : vector<16x128xf32>
    %c0_68 = arith.constant 0 : index
    %c0_69 = arith.constant 0 : index
    %94 = vector.load %arg6[%c0_68, %c0_69] : memref<1x128xf32, #tpu.memory_space<vmem>>, vector<1x128xf32>
    %95 = vector.broadcast %94 : vector<1x128xf32> to vector<16x128xf32>
    %96 = arith.mulf %93, %95 : vector<16x128xf32>
    %cst_70 = arith.constant dense<0.000000e+00> : vector<16xf32>
    %97 = vector.multi_reduction <add>, %96, %cst_70 [1] : vector<16x128xf32> to vector<16xf32>
    %98 = vector.shape_cast %97 : vector<16xf32> to vector<16x1xf32>
    %c0_71 = arith.constant 0 : index
    %c0_72 = arith.constant 0 : index
    %99 = vector.load %arg7[%c0_71, %c0_72] : memref<1x1xf32, #tpu.memory_space<vmem>>, vector<1x1xf32>
    %100 = vector.broadcast %99 : vector<1x1xf32> to vector<16x1xf32>
    %101 = arith.addf %98, %100 : vector<16x1xf32>
    %102 = math.absf %101 : vector<16x1xf32>
    %cst_73 = arith.constant 0.000000e+00 : f32
    %103 = vector.broadcast %cst_73 : f32 to vector<16x1xf32>
    %104 = arith.subf %103, %102 : vector<16x1xf32>
    %105 = math.exp %104 : vector<16x1xf32>
    %cst_74 = arith.constant 0.000000e+00 : f32
    %106 = vector.broadcast %cst_74 : f32 to vector<16x1xf32>
    %107 = arith.cmpf oge, %101, %106 : vector<16x1xf32>
    %cst_75 = arith.constant 1.000000e+00 : f32
    %108 = vector.broadcast %cst_75 : f32 to vector<16x1xf32>
    %109 = arith.addf %108, %105 : vector<16x1xf32>
    %cst_76 = arith.constant 1.000000e+00 : f32
    %110 = vector.broadcast %cst_76 : f32 to vector<16x1xf32>
    %111 = arith.divf %110, %109 : vector<16x1xf32>
    %cst_77 = arith.constant 1.000000e+00 : f32
    %112 = vector.broadcast %cst_77 : f32 to vector<16x1xf32>
    %113 = arith.addf %112, %105 : vector<16x1xf32>
    %114 = arith.divf %105, %113 : vector<16x1xf32>
    %115 = arith.select %107, %111, %114 : vector<16x1xi1>, vector<16x1xf32>
    %116 = vector.shape_cast %115 : vector<16x1xf32> to vector<16x1xf32>
    %117 = vector.broadcast %116 : vector<16x1xf32> to vector<16x128xf32>
    %c0_78 = arith.constant 0 : index
    %c0_79 = arith.constant 0 : index
    %118 = vector.load %arg8[%c0_78, %c0_79] : memref<16x128xf32, #tpu.memory_space<vmem>>, vector<16x128xf32>
    tpu.vector_store %arg8[%c0_78, %c0_79], %117 {strides = array<i32>} : memref<16x128xf32, #tpu.memory_space<vmem>>, vector<16x128xf32>,
    return
  }
  func.func @transform_0(%arg0: i32) -> (i32, i32, i32) {
    %c0_i32 = arith.constant 0 : i32
    %c0_i32_0 = arith.constant 0 : i32
    %c0_i32_1 = arith.constant 0 : i32
    return %c0_i32, %arg0, %c0_i32_0 : i32, i32, i32
  }
  func.func @transform_1(%arg0: i32) -> (i32, i32, i32, i32) {
    %c0_i32 = arith.constant 0 : i32
    %c0_i32_0 = arith.constant 0 : i32
    %c0_i32_1 = arith.constant 0 : i32
    %c0_i32_2 = arith.constant 0 : i32
    %c0_i32_3 = arith.constant 0 : i32
    return %c0_i32, %c0_i32_0, %c0_i32_1, %c0_i32_2 : i32, i32, i32, i32
  }
  func.func @transform_2(%arg0: i32) -> (i32, i32) {
    %c0_i32 = arith.constant 0 : i32
    %c0_i32_0 = arith.constant 0 : i32
    %c0_i32_1 = arith.constant 0 : i32
    return %c0_i32, %c0_i32_0 : i32, i32
  }
  func.func @transform_3(%arg0: i32) -> (i32, i32, i32) {
    %c0_i32 = arith.constant 0 : i32
    %c0_i32_0 = arith.constant 0 : i32
    %c0_i32_1 = arith.constant 0 : i32
    %c0_i32_2 = arith.constant 0 : i32
    return %c0_i32, %c0_i32_0, %c0_i32_1 : i32, i32, i32
  }
  func.func @transform_4(%arg0: i32) -> (i32, i32) {
    %c0_i32 = arith.constant 0 : i32
    %c0_i32_0 = arith.constant 0 : i32
    %c0_i32_1 = arith.constant 0 : i32
    return %c0_i32, %c0_i32_0 : i32, i32
  }
  func.func @transform_5(%arg0: i32) -> (i32, i32) {
    %c0_i32 = arith.constant 0 : i32
    %c0_i32_0 = arith.constant 0 : i32
    %c0_i32_1 = arith.constant 0 : i32
    return %c0_i32, %c0_i32_0 : i32, i32
  }
  func.func @transform_6(%arg0: i32) -> (i32, i32) {
    %c0_i32 = arith.constant 0 : i32
    %c0_i32_0 = arith.constant 0 : i32
    %c0_i32_1 = arith.constant 0 : i32
    return %c0_i32, %c0_i32_0 : i32, i32
  }
  func.func @transform_7(%arg0: i32) -> (i32, i32) {
    %c0_i32 = arith.constant 0 : i32
    %c0_i32_0 = arith.constant 0 : i32
    return %arg0, %c0_i32 : i32, i32
  }
}

</mosaic_0001>

<bundles_post_ra>
// kernel: tile.8
= control target key start
LH: loop header
LB: loop body
LE: loop exit
PB: predicated region body
PF: predicated region fallthrough
CT: control target
= control target key end

     0   :  { %s22_s0 = inlined_call_operand.vmem [shape: f32[32], index: 0, kind: input, shape index: {}]   ;;  %s23_s1 = inlined_call_operand.vmem [shape: f32[8,32], index: 1, kind: output, shape index: {}]  }
   0x1   :  { %v4_v0 = vld [vmem:[%s22_s0] ss:$0 sm:$0xff] }
   0x2   :  { %5 = vst [vmem:[%s23_s1] sm:$0xff] %v4_v0 }

// kernel: tile.9
= control target key start
LH: loop header
LB: loop body
LE: loop exit
PB: predicated region body
PF: predicated region fallthrough
CT: control target
= control target key end

     0   :  { %s7_s6 = smov 3  ;;  %s14_s9 = smov 3  ;;  %vm4_vm0 = vcmask 261120   ;;  %vm11_vm1 = vcmask 1048320   ;;  %vm18_vm2 = vcmask 785920   ;;  %vm25_vm3 = vcmask 523520   ;;  %s76_s0 = inlined_call_operand.vmem [shape: f32[8,32], index: 0, kind: input, shape index: {}]   ;;  %s77_s1 = inlined_call_operand.vmem [shape: f32[1,256], index: 1, kind: output, shape index: {}]  }
   0x1   :  { %v38_v0 = vld [vmem:[%s76_s0 + $0x3] ss:$4 sm:%s7_s6]   ;;  %s45_s10 = smov 96   ;;  %s21_s11 = smov 3  ;;  %v39_v1 = vld [vmem:[%s76_s0 + $0x2] ss:$4 sm:%s14_s9]  }
   0x2   :  { %9 = vrot.lane.b32.xlu0 %v38_v0, %s45_s10  ;;  %v40_v2 = vld [vmem:[%s76_s0 + $0x1] ss:$4 sm:%s21_s11]   ;;  %s2_s16 = smov 3  ;;  %s46_s17 = smov 32  }
   0x3   :  { %23 = vrot.lane.b32.xlu1 %v40_v2, %s46_s17  ;;  %v3_v3 = vld [vmem:[%s76_s0] ss:$4 sm:%s2_s16]   ;;  %s47_s0 = smov 64  }
   0x4   :  { %5 = vst.msk [vmem:[#allocation0] ss:$8 sm:$0x3] %vm4_vm0, %v3_v3  }
   0x6   :  { %16 = vrot.lane.b32.xlu0 %v39_v1, %s47_s0 }
  0x74   :  { %v10_v4 = vpop.permute.xlu0 %9  }
  0x75   :  { %12 = vst.msk [vmem:[#allocation0] ss:$8 sm:$0x3] %vm11_vm1, %v10_v4   ;;  %v24_v5 = vpop.permute.xlu1 %23  }
  0x78   :  { %v17_v6 = vpop.permute.xlu0 %16  }
  0x79   :  { %19 = vst.msk [vmem:[#allocation0] ss:$8 sm:$0x3] %vm18_vm2, %v17_v6  }
  0x7a   :  { %26 = vst.msk [vmem:[#allocation0] ss:$8 sm:$0x3] %vm25_vm3, %v24_v5  }
  0x81   :  { %v30_v7 = vld [vmem:[#allocation0] sm:$0x1]  ;;  %v34_v8 = vld [vmem:[#allocation0 + $0x8] sm:$0x1] }
  0x82   :  { %32 = vst [vmem:[%s77_s1] sm:$0x1] %v30_v7  ;;  %41 = vst [vmem:[%s77_s1 + $0x1] sm:$0x1] %v34_v8 }

// kernel: vgg1block_forward.1
= control target key start
LH: loop header
LB: loop body
LE: loop exit
PB: predicated region body
PF: predicated region fallthrough
CT: control target
= control target key end

     0   :  { %s7939_s1 = inlined_call_operand.vmem [shape: bf16[2,3,256,256], index: 1, kind: input, shape index: {}]   ;;  %s7940_s0 = inlined_call_operand.vmem [shape: bf16[18,16,256], index: 0, kind: input, shape index: {}]   ;;  %s7941_s3 = inlined_call_operand.vmem [shape: bf16[8,256,128], index: 3, kind: input, shape index: {}]   ;;  %s7942_s2 = inlined_call_operand.vmem [shape: f32[1,256], index: 2, kind: input, shape index: {}]   ;;  %s7943_s6 = inlined_call_operand.<no memory space> [shape: f32[1,1], index: 6, kind: input, shape index: {}]   ;;  %s7944_s4 = inlined_call_operand.vmem [shape: f32[1,128], index: 4, kind: input, shape index: {}]   ;;  %s7945_s5 = inlined_call_operand.vmem [shape: f32[1,128], index: 5, kind: input, shape index: {}]   ;;  %s7946_s7 = inlined_call_operand.vmem [shape: f32[16,128], index: 7, kind: output, shape index: {}]  }
   0x1   :  { %v5980_v0 = vld [vmem:[%s7939_s1 + $0x104] ss:$8 sps:$4 sm:$0xff]   ;;  %v5984_v2 = vld [vmem:[%s7939_s1 + $0x100] ss:$8 sps:$4 sm:$0xff]   ;;  %v5986_v4 = vld [vmem:[%s7939_s1 + $0x114] ss:$8 sps:$4 sm:$0xff]  }
   0x2   :  { %v5982_v1 = vld [vmem:[%s7939_s1 + $0x404] ss:$8 sps:$4 sm:$0xff]   ;;  %512 = vmatprep.subr.bf16.mxu0 %v5980_v0  ;;  %v5985_v3 = vld [vmem:[%s7939_s1 + $0x400] ss:$8 sps:$4 sm:$0xff]   ;;  %v5988_v5 = vld [vmem:[%s7939_s1 + $0x414] ss:$8 sps:$4 sm:$0xff]  }
   0x3   :  { %2054 = vmatprep.subr.bf16.mxu1 %v5982_v1  ;;  %513 = vmatpush1.bf16.msra.mxu0 %v5984_v2  ;;  %v5990_v6 = vld [vmem:[%s7939_s1 + $0x110] ss:$8 sps:$4 sm:$0xff]   ;;  %v5992_v8 = vld [vmem:[%s7939_s1 + $0x124] ss:$8 sps:$4 sm:$0xff]   ;;  %v5996_v10 = vld [vmem:[%s7939_s1 + $0x120] ss:$8 sps:$4 sm:$0xff]  }
   0x4   :  { %2055 = vmatpush1.bf16.msra.mxu1 %v5985_v3  ;;  %514 = vmatprep.subr.bf16.mxu0 %v5986_v4  ;;  %v5991_v7 = vld [vmem:[%s7939_s1 + $0x410] ss:$8 sps:$4 sm:$0xff]   ;;  %v5994_v9 = vld [vmem:[%s7939_s1 + $0x424] ss:$8 sps:$4 sm:$0xff]   ;;  %v5997_v11 = vld [vmem:[%s7939_s1 + $0x420] ss:$8 sps:$4 sm:$0xff]  }
   0x5   :  { %2056 = vmatprep.subr.bf16.mxu1 %v5988_v5  ;;  %v5998_v12 = vld [vmem:[%s7939_s1 + $0x134] ss:$8 sps:$4 sm:$0xff]   ;;  %v6002_v14 = vld [vmem:[%s7939_s1 + $0x130] ss:$8 sps:$4 sm:$0xff]   ;;  %v6004_v16 = vld [vmem:[%s7939_s1 + $0x144] ss:$8 sps:$4 sm:$0xff]  }
   0x6   :  { %v6000_v13 = vld [vmem:[%s7939_s1 + $0x434] ss:$8 sps:$4 sm:$0xff]   ;;  %v6003_v15 = vld [vmem:[%s7939_s1 + $0x430] ss:$8 sps:$4 sm:$0xff]   ;;  %v6006_v17 = vld [vmem:[%s7939_s1 + $0x444] ss:$8 sps:$4 sm:$0xff]  }
   0x7   :  { %515 = vmatpush1.bf16.msra.mxu0 %v5990_v6  ;;  %v6008_v18 = vld [vmem:[%s7939_s1 + $0x140] ss:$8 sps:$4 sm:$0xff]   ;;  %v6010_v20 = vld [vmem:[%s7939_s1 + $0x154] ss:$8 sps:$4 sm:$0xff]   ;;  %v6014_v22 = vld [vmem:[%s7939_s1 + $0x150] ss:$8 sps:$4 sm:$0xff]  }
   0x8   :  { %2057 = vmatpush1.bf16.msra.mxu1 %v5991_v7  ;;  %516 = vmatprep.subr.bf16.mxu0 %v5992_v8  ;;  %v6009_v19 = vld [vmem:[%s7939_s1 + $0x440] ss:$8 sps:$4 sm:$0xff]   ;;  %v6012_v21 = vld [vmem:[%s7939_s1 + $0x454] ss:$8 sps:$4 sm:$0xff]   ;;  %v6015_v23 = vld [vmem:[%s7939_s1 + $0x450] ss:$8 sps:$4 sm:$0xff]  }
   0x9   :  { %2058 = vmatprep.subr.bf16.mxu1 %v5994_v9  ;;  %v6016_v24 = vld [vmem:[%s7939_s1 + $0x164] ss:$8 sps:$4 sm:$0xff]   ;;  %v6020_v26 = vld [vmem:[%s7939_s1 + $0x160] ss:$8 sps:$4 sm:$0xff]   ;;  %v6022_v28 = vld [vmem:[%s7939_s1 + $0x174] ss:$8 sps:$4 sm:$0xff]  }
   0xa   :  { %v6018_v25 = vld [vmem:[%s7939_s1 + $0x464] ss:$8 sps:$4 sm:$0xff]   ;;  %v6021_v27 = vld [vmem:[%s7939_s1 + $0x460] ss:$8 sps:$4 sm:$0xff]   ;;  %v6024_v29 = vld [vmem:[%s7939_s1 + $0x474] ss:$8 sps:$4 sm:$0xff]  }
   0xb   :  { %517 = vmatpush1.bf16.msra.mxu0 %v5996_v10  ;;  %v6026_v30 = vld [vmem:[%s7939_s1 + $0x170] ss:$8 sps:$4 sm:$0xff]   ;;  %v6028_v32 = vld [vmem:[%s7939_s1 + $0x184] ss:$8 sps:$4 sm:$0xff]   ;;  %v6032_v34 = vld [vmem:[%s7939_s1 + $0x180] ss:$8 sps:$4 sm:$0xff]  }
   0xc   :  { %2059 = vmatpush1.bf16.msra.mxu1 %v5997_v11  ;;  %518 = vmatprep.subr.bf16.mxu0 %v5998_v12  ;;  %v6027_v31 = vld [vmem:[%s7939_s1 + $0x470] ss:$8 sps:$4 sm:$0xff]   ;;  %v6030_v33 = vld [vmem:[%s7939_s1 + $0x484] ss:$8 sps:$4 sm:$0xff]   ;;  %v6033_v35 = vld [vmem:[%s7939_s1 + $0x480] ss:$8 sps:$4 sm:$0xff]  }
   0xd   :  { %2060 = vmatprep.subr.bf16.mxu1 %v6000_v13  ;;  %v6034_v36 = vld [vmem:[%s7939_s1 + $0x194] ss:$8 sps:$4 sm:$0xff]   ;;  %v6038_v38 = vld [vmem:[%s7939_s1 + $0x190] ss:$8 sps:$4 sm:$0xff]   ;;  %v6040_v40 = vld [vmem:[%s7939_s1 + $0x1a4] ss:$8 sps:$4 sm:$0xff]  }
   0xe   :  { %v6036_v37 = vld [vmem:[%s7939_s1 + $0x494] ss:$8 sps:$4 sm:$0xff]   ;;  %v6039_v39 = vld [vmem:[%s7939_s1 + $0x490] ss:$8 sps:$4 sm:$0xff]   ;;  %v6042_v41 = vld [vmem:[%s7939_s1 + $0x4a4] ss:$8 sps:$4 sm:$0xff]  }
   0xf   :  { %519 = vmatpush1.bf16.msra.mxu0 %v6002_v14  ;;  %v6044_v42 = vld [vmem:[%s7939_s1 + $0x1a0] ss:$8 sps:$4 sm:$0xff]   ;;  %v6046_v44 = vld [vmem:[%s7939_s1 + $0x1b4] ss:$8 sps:$4 sm:$0xff]   ;;  %v6050_v46 = vld [vmem:[%s7939_s1 + $0x1b0] ss:$8 sps:$4 sm:$0xff]  }
  0x10   :  { %2061 = vmatpush1.bf16.msra.mxu1 %v6003_v15  ;;  %520 = vmatprep.subr.bf16.mxu0 %v6004_v16  ;;  %v6045_v43 = vld [vmem:[%s7939_s1 + $0x4a0] ss:$8 sps:$4 sm:$0xff]   ;;  %v6048_v45 = vld [vmem:[%s7939_s1 + $0x4b4] ss:$8 sps:$4 sm:$0xff]   ;;  %v6051_v47 = vld [vmem:[%s7939_s1 + $0x4b0] ss:$8 sps:$4 sm:$0xff]  }
  0x11   :  { %2062 = vmatprep.subr.bf16.mxu1 %v6006_v17  ;;  %v6685_v48 = vld [vmem:[%s7940_s0 + $0x14] ss:$8 sps:$4 sm:$0xff]   ;;  %v6052_v49 = vld [vmem:[%s7939_s1 + $0x1c4] ss:$8 sps:$4 sm:$0xff]   ;;  %v6056_v51 = vld [vmem:[%s7939_s1 + $0x1c0] ss:$8 sps:$4 sm:$0xff]  }
  0x12   :  { %v6054_v50 = vld [vmem:[%s7939_s1 + $0x4c4] ss:$8 sps:$4 sm:$0xff]   ;;  %544 = vmatprep.mubr.bf16.mxu0 %v6685_v48  ;;  %2086 = vmatprep.mubr.bf16.mxu1 %v6685_v48  ;;  %v6057_v52 = vld [vmem:[%s7939_s1 + $0x4c0] ss:$8 sps:$4 sm:$0xff]   ;;  %v6058_v53 = vld [vmem:[%s7939_s1 + $0x1d4] ss:$8 sps:$4 sm:$0xff]  }
  0x13   :  { %521 = vmatpush1.bf16.msra.mxu0 %v6008_v18  ;;  %v6060_v54 = vld [vmem:[%s7939_s1 + $0x4d4] ss:$8 sps:$4 sm:$0xff]   ;;  %v6062_v55 = vld [vmem:[%s7939_s1 + $0x1d0] ss:$8 sps:$4 sm:$0xff]   ;;  %v6064_v57 = vld [vmem:[%s7939_s1 + $0x1e4] ss:$8 sps:$4 sm:$0xff]  }
  0x14   :  { %2063 = vmatpush1.bf16.msra.mxu1 %v6009_v19  ;;  %522 = vmatprep.subr.bf16.mxu0 %v6010_v20  ;;  %v6063_v56 = vld [vmem:[%s7939_s1 + $0x4d0] ss:$8 sps:$4 sm:$0xff]   ;;  %v6066_v58 = vld [vmem:[%s7939_s1 + $0x4e4] ss:$8 sps:$4 sm:$0xff]   ;;  %v6068_v59 = vld [vmem:[%s7939_s1 + $0x1e0] ss:$8 sps:$4 sm:$0xff]  }
  0x15   :  { %2064 = vmatprep.subr.bf16.mxu1 %v6012_v21  ;;  %v6069_v60 = vld [vmem:[%s7939_s1 + $0x4e0] ss:$8 sps:$4 sm:$0xff]   ;;  %v6070_v61 = vld [vmem:[%s7939_s1 + $0x1f4] ss:$8 sps:$4 sm:$0xff]   ;;  %v6074_v63 = vld [vmem:[%s7939_s1 + $0x1f0] ss:$8 sps:$4 sm:$0xff]  }
  0x16   :  { %v6072_v62 = vld [vmem:[%s7939_s1 + $0x4f4] ss:$8 sps:$4 sm:$0xff]   ;;  %v6075_v0 = vld [vmem:[%s7939_s1 + $0x4f0] ss:$8 sps:$4 sm:$0xff]   ;;  %v6081_v1 = vld [vmem:[%s7939_s1 + $0x4] ss:$8 sps:$4 sm:$0xff]  }
  0x17   :  { %523 = vmatpush1.bf16.msra.mxu0 %v6014_v22  ;;  %v6084_v2 = vld [vmem:[%s7939_s1 + $0x304] ss:$8 sps:$4 sm:$0xff]   ;;  %v6746_v3 = vld [vmem:[%s7940_s0 + $0x10] ss:$8 sps:$4 sm:$0xff]   ;;  %v6079_v4 = vld [vmem:[%s7939_s1] ss:$8 sps:$4 sm:$0xff]  }
  0x18   :  { %2065 = vmatpush1.bf16.msra.mxu1 %v6015_v23  ;;  %524 = vmatprep.subr.bf16.mxu0 %v6016_v24  ;;  %v6082_v5 = vld [vmem:[%s7939_s1 + $0x300] ss:$8 sps:$4 sm:$0xff]   ;;  %v6757_v6 = vld [vmem:[%s7940_s0 + $0x24] ss:$8 sps:$4 sm:$0xff]   ;;  %v6090_v7 = vld [vmem:[%s7939_s1 + $0x14] ss:$8 sps:$4 sm:$0xff]  }
  0x19   :  { %2066 = vmatprep.subr.bf16.mxu1 %v6018_v25  ;;  %v6093_v8 = vld [vmem:[%s7939_s1 + $0x314] ss:$8 sps:$4 sm:$0xff]   ;;  %v6088_v9 = vld [vmem:[%s7939_s1 + $0x10] ss:$8 sps:$4 sm:$0xff]   ;;  %v6099_v11 = vld [vmem:[%s7939_s1 + $0x24] ss:$8 sps:$4 sm:$0xff]  }
  0x1a   :  { %v6091_v10 = vld [vmem:[%s7939_s1 + $0x310] ss:$8 sps:$4 sm:$0xff]   ;;  %v6102_v12 = vld [vmem:[%s7939_s1 + $0x324] ss:$8 sps:$4 sm:$0xff]   ;;  %v6784_v13 = vld [vmem:[%s7940_s0 + $0x20] ss:$8 sps:$4 sm:$0xff]  }
  0x1b   :  { %525 = vmatpush1.bf16.msra.mxu0 %v6020_v26  ;;  %v6789_v14 = vld [vmem:[%s7940_s0 + $0x34] ss:$8 sps:$4 sm:$0xff]   ;;  %v6097_v15 = vld [vmem:[%s7939_s1 + $0x20] ss:$8 sps:$4 sm:$0xff]   ;;  %v6106_v19 = vld [vmem:[%s7939_s1 + $0x30] ss:$8 sps:$4 sm:$0xff]  }
  0x1c   :  { %2067 = vmatpush1.bf16.msra.mxu1 %v6021_v27  ;;  %526 = vmatprep.subr.bf16.mxu0 %v6022_v28  ;;  %v6100_v16 = vld [vmem:[%s7939_s1 + $0x320] ss:$8 sps:$4 sm:$0xff]   ;;  %v6108_v17 = vld [vmem:[%s7939_s1 + $0x34] ss:$8 sps:$4 sm:$0xff]   ;;  %v6109_v20 = vld [vmem:[%s7939_s1 + $0x330] ss:$8 sps:$4 sm:$0xff]  }
  0x1d   :  { %2068 = vmatprep.subr.bf16.mxu1 %v6024_v29  ;;  %v6111_v18 = vld [vmem:[%s7939_s1 + $0x334] ss:$8 sps:$4 sm:$0xff]   ;;  %v6117_v21 = vld [vmem:[%s7939_s1 + $0x44] ss:$8 sps:$4 sm:$0xff]   ;;  %v6822_v23 = vld [vmem:[%s7940_s0 + $0x30] ss:$8 sps:$4 sm:$0xff]  }
  0x1e   :  { %v6120_v22 = vld [vmem:[%s7939_s1 + $0x344] ss:$8 sps:$4 sm:$0xff]   ;;  %v6115_v25 = vld [vmem:[%s7939_s1 + $0x40] ss:$8 sps:$4 sm:$0xff]   ;;  %v6126_v27 = vld [vmem:[%s7939_s1 + $0x54] ss:$8 sps:$4 sm:$0xff]  }
  0x1f   :  { %527 = vmatpush1.bf16.msra.mxu0 %v6026_v30  ;;  %v6827_v24 = vld [vmem:[%s7940_s0 + $0x44] ss:$8 sps:$4 sm:$0xff]   ;;  %v6118_v26 = vld [vmem:[%s7939_s1 + $0x340] ss:$8 sps:$4 sm:$0xff]   ;;  %v6129_v28 = vld [vmem:[%s7939_s1 + $0x354] ss:$8 sps:$4 sm:$0xff]  }
  0x20   :  { %2069 = vmatpush1.bf16.msra.mxu1 %v6027_v31  ;;  %528 = vmatprep.subr.bf16.mxu0 %v6028_v32  ;;  %v6124_v29 = vld [vmem:[%s7939_s1 + $0x50] ss:$8 sps:$4 sm:$0xff]   ;;  %v6135_v31 = vld [vmem:[%s7939_s1 + $0x64] ss:$8 sps:$4 sm:$0xff]  }
  0x21   :  { %2070 = vmatprep.subr.bf16.mxu1 %v6030_v33  ;;  %v6127_v30 = vld [vmem:[%s7939_s1 + $0x350] ss:$8 sps:$4 sm:$0xff]   ;;  %v6138_v32 = vld [vmem:[%s7939_s1 + $0x364] ss:$8 sps:$4 sm:$0xff]   ;;  %v6860_v33 = vld [vmem:[%s7940_s0 + $0x40] ss:$8 sps:$4 sm:$0xff]  }
  0x23   :  { %529 = vmatpush1.bf16.msra.mxu0 %v6032_v34  ;;  %v6865_v34 = vld [vmem:[%s7940_s0 + $0x54] ss:$8 sps:$4 sm:$0xff]  }
  0x24   :  { %2071 = vmatpush1.bf16.msra.mxu1 %v6033_v35  ;;  %530 = vmatprep.subr.bf16.mxu0 %v6034_v36  ;;  %v6133_v35 = vld [vmem:[%s7939_s1 + $0x60] ss:$8 sps:$4 sm:$0xff]  }
  0x25   :  { %2072 = vmatprep.subr.bf16.mxu1 %v6036_v37  ;;  %v6136_v36 = vld [vmem:[%s7939_s1 + $0x360] ss:$8 sps:$4 sm:$0xff]   ;;  %v6144_v37 = vld [vmem:[%s7939_s1 + $0x74] ss:$8 sps:$4 sm:$0xff]  }
  0x27   :  { %531 = vmatpush1.bf16.msra.mxu0 %v6038_v38  ;;  %v6147_v38 = vld [vmem:[%s7939_s1 + $0x374] ss:$8 sps:$4 sm:$0xff]  }
  0x28   :  { %2073 = vmatpush1.bf16.msra.mxu1 %v6039_v39  ;;  %532 = vmatprep.subr.bf16.mxu0 %v6040_v40  ;;  %v6142_v39 = vld [vmem:[%s7939_s1 + $0x70] ss:$8 sps:$4 sm:$0xff]  }
  0x29   :  { %2074 = vmatprep.subr.bf16.mxu1 %v6042_v41  ;;  %v6145_v40 = vld [vmem:[%s7939_s1 + $0x370] ss:$8 sps:$4 sm:$0xff]   ;;  %v6153_v41 = vld [vmem:[%s7939_s1 + $0x84] ss:$8 sps:$4 sm:$0xff]  }
  0x2b   :  { %533 = vmatpush1.bf16.msra.mxu0 %v6044_v42  ;;  %v6156_v42 = vld [vmem:[%s7939_s1 + $0x384] ss:$8 sps:$4 sm:$0xff]  }
  0x2c   :  { %2075 = vmatpush1.bf16.msra.mxu1 %v6045_v43  ;;  %534 = vmatprep.subr.bf16.mxu0 %v6046_v44  ;;  %v6898_v43 = vld [vmem:[%s7940_s0 + $0x50] ss:$8 sps:$4 sm:$0xff]   ;;  %v6903_v44 = vld [vmem:[%s7940_s0 + $0x64] ss:$8 sps:$4 sm:$0xff]  }
  0x2d   :  { %2076 = vmatprep.subr.bf16.mxu1 %v6048_v45  ;;  %v6151_v45 = vld [vmem:[%s7939_s1 + $0x80] ss:$8 sps:$4 sm:$0xff]  }
  0x2f   :  { %535 = vmatpush1.bf16.msra.mxu0 %v6050_v46  ;;  %v6154_v46 = vld [vmem:[%s7939_s1 + $0x380] ss:$8 sps:$4 sm:$0xff]  }
  0x30   :  { %2077 = vmatpush1.bf16.msra.mxu1 %v6051_v47  ;;  %536 = vmatprep.subr.bf16.mxu0 %v6052_v49  ;;  %v6162_v47 = vld [vmem:[%s7939_s1 + $0x94] ss:$8 sps:$4 sm:$0xff]  }
  0x31   :  { %2078 = vmatprep.subr.bf16.mxu1 %v6054_v50  ;;  %v6165_v49 = vld [vmem:[%s7939_s1 + $0x394] ss:$8 sps:$4 sm:$0xff]   ;;  %v6160_v50 = vld [vmem:[%s7939_s1 + $0x90] ss:$8 sps:$4 sm:$0xff]  }
  0x33   :  { %537 = vmatpush1.bf16.msra.mxu0 %v6056_v51  ;;  %v6163_v51 = vld [vmem:[%s7939_s1 + $0x390] ss:$8 sps:$4 sm:$0xff]  }
  0x34   :  { %2079 = vmatpush1.bf16.msra.mxu1 %v6057_v52  ;;  %538 = vmatprep.subr.bf16.mxu0 %v6058_v53  ;;  %v6171_v52 = vld [vmem:[%s7939_s1 + $0xa4] ss:$8 sps:$4 sm:$0xff]  }
  0x35   :  { %2080 = vmatprep.subr.bf16.mxu1 %v6060_v54  ;;  %v6174_v53 = vld [vmem:[%s7939_s1 + $0x3a4] ss:$8 sps:$4 sm:$0xff]   ;;  %v6936_v54 = vld [vmem:[%s7940_s0 + $0x60] ss:$8 sps:$4 sm:$0xff]  }
  0x37   :  { %539 = vmatpush1.bf16.msra.mxu0 %v6062_v55  ;;  %v6941_v55 = vld [vmem:[%s7940_s0 + $0x74] ss:$8 sps:$4 sm:$0xff]  }
  0x38   :  { %2081 = vmatpush1.bf16.msra.mxu1 %v6063_v56  ;;  %540 = vmatprep.subr.bf16.mxu0 %v6064_v57  ;;  %v6169_v56 = vld [vmem:[%s7939_s1 + $0xa0] ss:$8 sps:$4 sm:$0xff]  }
  0x39   :  { %2082 = vmatprep.subr.bf16.mxu1 %v6066_v58  ;;  %v6172_v57 = vld [vmem:[%s7939_s1 + $0x3a0] ss:$8 sps:$4 sm:$0xff]   ;;  %v6180_v58 = vld [vmem:[%s7939_s1 + $0xb4] ss:$8 sps:$4 sm:$0xff]  }
  0x3b   :  { %541 = vmatpush1.bf16.msra.mxu0 %v6068_v59  ;;  %v6183_v59 = vld [vmem:[%s7939_s1 + $0x3b4] ss:$8 sps:$4 sm:$0xff]  }
  0x3c   :  { %2083 = vmatpush1.bf16.msra.mxu1 %v6069_v60  ;;  %542 = vmatprep.subr.bf16.mxu0 %v6070_v61  ;;  %v6178_v60 = vld [vmem:[%s7939_s1 + $0xb0] ss:$8 sps:$4 sm:$0xff]  }
  0x3d   :  { %2084 = vmatprep.subr.bf16.mxu1 %v6072_v62  ;;  %v6181_v61 = vld [vmem:[%s7939_s1 + $0x3b0] ss:$8 sps:$4 sm:$0xff]   ;;  %v6189_v62 = vld [vmem:[%s7939_s1 + $0xc4] ss:$8 sps:$4 sm:$0xff]  }
  0x3f   :  { %543 = vmatpush1.bf16.msra.mxu0 %v6074_v63  ;;  %v6192_v63 = vld [vmem:[%s7939_s1 + $0x3c4] ss:$8 sps:$4 sm:$0xff]  }
  0x40   :  { %2085 = vmatpush1.bf16.msra.mxu1 %v6075_v0  ;;  %1025 = vmatprep.subr.bf16.mxu0 %v6081_v1  ;;  %v6974_v0 = vld [vmem:[%s7940_s0 + $0x70] ss:$8 sps:$4 sm:$0xff]   ;;  %v6979_v1 = vld [vmem:[%s7940_s0 + $0x84] ss:$8 sps:$4 sm:$0xff]  }
  0x41   :  { %2407 = vmatprep.subr.bf16.mxu1 %v6084_v2  ;;  %v6187_v2 = vld [vmem:[%s7939_s1 + $0xc0] ss:$8 sps:$4 sm:$0xff]  }
  0x42   :  { %545 = vmatmul.mubr.bf16.vlgmr.msra.gmra.mrb[0].mxu0 %v6746_v3 }
  0x43   :  { %2087 = vmatmul.mubr.bf16.vlgmr.msra.gmra.mrb[0].mxu1 %v6746_v3  ;;  %1026 = vmatpush1.bf16.msra.mxu0 %v6079_v4  ;;  %v6190_v4 = vld [vmem:[%s7939_s1 + $0x3c0] ss:$8 sps:$4 sm:$0xff]  }
  0x44   :  { %2408 = vmatpush1.bf16.msra.mxu1 %v6082_v5  ;;  %554 = vmatprep.mubr.bf16.mxu0 %v6757_v6  ;;  %v6198_v5 = vld [vmem:[%s7939_s1 + $0xd4] ss:$8 sps:$4 sm:$0xff]  }
  0x45   :  { %2096 = vmatprep.mubr.bf16.mxu1 %v6757_v6  ;;  %1027 = vmatprep.subr.bf16.mxu0 %v6090_v7  ;;  %v6201_v7 = vld [vmem:[%s7939_s1 + $0x3d4] ss:$8 sps:$4 sm:$0xff]  }
  0x46   :  { %2409 = vmatprep.subr.bf16.mxu1 %v6093_v8  ;;  %v6196_v8 = vld [vmem:[%s7939_s1 + $0xd0] ss:$8 sps:$4 sm:$0xff]  }
  0x47   :  { %1028 = vmatpush1.bf16.msra.mxu0 %v6088_v9  ;;  %v6199_v9 = vld [vmem:[%s7939_s1 + $0x3d0] ss:$8 sps:$4 sm:$0xff]  }
  0x48   :  { %2410 = vmatpush1.bf16.msra.mxu1 %v6091_v10  ;;  %1029 = vmatprep.subr.bf16.mxu0 %v6099_v11  ;;  %v6207_v10 = vld [vmem:[%s7939_s1 + $0xe4] ss:$8 sps:$4 sm:$0xff]  }
  0x49   :  { %2411 = vmatprep.subr.bf16.mxu1 %v6102_v12  ;;  %v6210_v11 = vld [vmem:[%s7939_s1 + $0x3e4] ss:$8 sps:$4 sm:$0xff]   ;;  %v7012_v12 = vld [vmem:[%s7940_s0 + $0x80] ss:$8 sps:$4 sm:$0xff]  }
  0x4a   :  { %555 = vmatmul.mubr.bf16.gmra.mrb[4].mxu0 %v6784_v13 }
  0x4b   :  { %2097 = vmatmul.mubr.bf16.gmra.mrb[4].mxu1 %v6784_v13  ;;  %564 = vmatprep.mubr.bf16.mxu0 %v6789_v14 }
  0x4c   :  { %2106 = vmatprep.mubr.bf16.mxu1 %v6789_v14  ;;  %1030 = vmatpush1.bf16.msra.mxu0 %v6097_v15  ;;  %v7017_v15 = vld [vmem:[%s7940_s0 + $0x94] ss:$8 sps:$4 sm:$0xff]  }
  0x4d   :  { %2412 = vmatpush1.bf16.msra.mxu1 %v6100_v16  ;;  %1031 = vmatprep.subr.bf16.mxu0 %v6108_v17  ;;  %v6205_v16 = vld [vmem:[%s7939_s1 + $0xe0] ss:$8 sps:$4 sm:$0xff]  }
  0x4e   :  { %2413 = vmatprep.subr.bf16.mxu1 %v6111_v18  ;;  %v6208_v17 = vld [vmem:[%s7939_s1 + $0x3e0] ss:$8 sps:$4 sm:$0xff]   ;;  %v6216_v18 = vld [vmem:[%s7939_s1 + $0xf4] ss:$8 sps:$4 sm:$0xff]  }
  0x50   :  { %1032 = vmatpush1.bf16.msra.mxu0 %v6106_v19  ;;  %v6219_v19 = vld [vmem:[%s7939_s1 + $0x3f4] ss:$8 sps:$4 sm:$0xff]  }
  0x51   :  { %2414 = vmatpush1.bf16.msra.mxu1 %v6109_v20  ;;  %1033 = vmatprep.subr.bf16.mxu0 %v6117_v21  ;;  %v6214_v20 = vld [vmem:[%s7939_s1 + $0xf0] ss:$8 sps:$4 sm:$0xff]  }
  0x52   :  { %2415 = vmatprep.subr.bf16.mxu1 %v6120_v22  ;;  %565 = vmatmul.mubr.bf16.gmra.mrb[8].mxu0 %v6822_v23  ;;  %v6217_v21 = vld [vmem:[%s7939_s1 + $0x3f0] ss:$8 sps:$4 sm:$0xff]   ;;  %v6225_v22 = vld [vmem:[%s7939_s1 + $0x204] ss:$8 sps:$4 sm:$0xff]  }
  0x53   :  { %2107 = vmatmul.mubr.bf16.gmra.mrb[8].mxu1 %v6822_v23  ;;  %574 = vmatprep.mubr.bf16.mxu0 %v6827_v24 }
  0x54   :  { %2116 = vmatprep.mubr.bf16.mxu1 %v6827_v24  ;;  %1034 = vmatpush1.bf16.msra.mxu0 %v6115_v25  ;;  %v6228_v25 = vld [vmem:[%s7939_s1 + $0x504] ss:$8 sps:$4 sm:$0xff]  }
  0x55   :  { %2416 = vmatpush1.bf16.msra.mxu1 %v6118_v26  ;;  %1035 = vmatprep.subr.bf16.mxu0 %v6126_v27  ;;  %v7050_v26 = vld [vmem:[%s7940_s0 + $0x90] ss:$8 sps:$4 sm:$0xff]   ;;  %v7055_v27 = vld [vmem:[%s7940_s0 + $0xa4] ss:$8 sps:$4 sm:$0xff]  }
  0x56   :  { %2417 = vmatprep.subr.bf16.mxu1 %v6129_v28  ;;  %v7064_v28 = vld [vmem:[%s7940_s0 + $0xa0] ss:$8 sps:$4 sm:$0xff]  }
  0x58   :  { %1036 = vmatpush1.bf16.msra.mxu0 %v6124_v29  ;;  %v7069_v29 = vld [vmem:[%s7940_s0 + $0xb4] ss:$8 sps:$4 sm:$0xff]  }
  0x59   :  { %2418 = vmatpush1.bf16.msra.mxu1 %v6127_v30  ;;  %1037 = vmatprep.subr.bf16.mxu0 %v6135_v31  ;;  %v7078_v30 = vld [vmem:[%s7940_s0 + $0xb0] ss:$8 sps:$4 sm:$0xff]   ;;  %v7083_v31 = vld [vmem:[%s7940_s0 + $0xc4] ss:$8 sps:$4 sm:$0xff]  }
  0x5a   :  { %2419 = vmatprep.subr.bf16.mxu1 %v6138_v32  ;;  %575 = vmatmul.mubr.bf16.gmra.mrb[12].mxu0 %v6860_v33  ;;  %v7092_v32 = vld [vmem:[%s7940_s0 + $0xc0] ss:$8 sps:$4 sm:$0xff]  }
  0x5b   :  { %2117 = vmatmul.mubr.bf16.gmra.mrb[12].mxu1 %v6860_v33  ;;  %584 = vmatprep.mubr.bf16.mxu0 %v6865_v34 }
  0x5c   :  { %2126 = vmatprep.mubr.bf16.mxu1 %v6865_v34  ;;  %1038 = vmatpush1.bf16.msra.mxu0 %v6133_v35  ;;  %v7097_v35 = vld [vmem:[%s7940_s0 + $0xd4] ss:$8 sps:$4 sm:$0xff]  }
  0x5d   :  { %2420 = vmatpush1.bf16.msra.mxu1 %v6136_v36  ;;  %1039 = vmatprep.subr.bf16.mxu0 %v6144_v37  ;;  %v7106_v36 = vld [vmem:[%s7940_s0 + $0xd0] ss:$8 sps:$4 sm:$0xff]   ;;  %v7111_v37 = vld [vmem:[%s7940_s0 + $0xe4] ss:$8 sps:$4 sm:$0xff]  }
  0x5e   :  { %2421 = vmatprep.subr.bf16.mxu1 %v6147_v38  ;;  %v7120_v38 = vld [vmem:[%s7940_s0 + $0xe0] ss:$8 sps:$4 sm:$0xff]  }
  0x60   :  { %1040 = vmatpush1.bf16.msra.mxu0 %v6142_v39  ;;  %v7125_v39 = vld [vmem:[%s7940_s0 + $0xf4] ss:$8 sps:$4 sm:$0xff]  }
  0x61   :  { %2422 = vmatpush1.bf16.msra.mxu1 %v6145_v40  ;;  %1041 = vmatprep.subr.bf16.mxu0 %v6153_v41  ;;  %v7134_v40 = vld [vmem:[%s7940_s0 + $0xf0] ss:$8 sps:$4 sm:$0xff]   ;;  %v6211_v41 = vld [vmem:[%s7940_s0 + $0x104] ss:$8 sps:$4 sm:$0xff]  }
  0x62   :  { %2423 = vmatprep.subr.bf16.mxu1 %v6156_v42  ;;  %585 = vmatmul.mubr.bf16.gmra.mrb[16].mxu0 %v6898_v43  ;;  %v6213_v42 = vld [vmem:[%s7940_s0 + $0x100] ss:$8 sps:$4 sm:$0xff]  }
  0x63   :  { %2127 = vmatmul.mubr.bf16.gmra.mrb[16].mxu1 %v6898_v43  ;;  %594 = vmatprep.mubr.bf16.mxu0 %v6903_v44 }
  0x64   :  { %2136 = vmatprep.mubr.bf16.mxu1 %v6903_v44  ;;  %1042 = vmatpush1.bf16.msra.mxu0 %v6151_v45  ;;  %v6222_v45 = vld [vmem:[%s7940_s0 + $0x4] ss:$8 sps:$4 sm:$0xff]  }
  0x65   :  { %2424 = vmatpush1.bf16.msra.mxu1 %v6154_v46  ;;  %1043 = vmatprep.subr.bf16.mxu0 %v6162_v47  ;;  %v6220_v46 = vld [vmem:[%s7940_s0] ss:$8 sps:$4 sm:$0xff]  }
  0x66   :  { %2425 = vmatprep.subr.bf16.mxu1 %v6165_v49  ;;  %v6223_v47 = vld [vmem:[%s7939_s1 + $0x200] ss:$8 sps:$4 sm:$0xff]  }
  0x67   :  { %v6226_v49 = vld [vmem:[%s7939_s1 + $0x500] ss:$8 sps:$4 sm:$0xff]  }
  0x68   :  { %1044 = vmatpush1.bf16.msra.mxu0 %v6160_v50  ;;  %v6231_v50 = vld [vmem:[%s7939_s1 + $0x214] ss:$8 sps:$4 sm:$0xff]  }
  0x69   :  { %2426 = vmatpush1.bf16.msra.mxu1 %v6163_v51  ;;  %1045 = vmatprep.subr.bf16.mxu0 %v6171_v52  ;;  %v6234_v51 = vld [vmem:[%s7939_s1 + $0x514] ss:$8 sps:$4 sm:$0xff]   ;;  %v6229_v52 = vld [vmem:[%s7939_s1 + $0x210] ss:$8 sps:$4 sm:$0xff]  }
  0x6a   :  { %2427 = vmatprep.subr.bf16.mxu1 %v6174_v53  ;;  %595 = vmatmul.mubr.bf16.gmra.mrb[20].mxu0 %v6936_v54  ;;  %v6232_v53 = vld [vmem:[%s7939_s1 + $0x510] ss:$8 sps:$4 sm:$0xff]  }
  0x6b   :  { %2137 = vmatmul.mubr.bf16.gmra.mrb[20].mxu1 %v6936_v54  ;;  %604 = vmatprep.mubr.bf16.mxu0 %v6941_v55 }
  0x6c   :  { %2146 = vmatprep.mubr.bf16.mxu1 %v6941_v55  ;;  %1046 = vmatpush1.bf16.msra.mxu0 %v6169_v56  ;;  %v6237_v56 = vld [vmem:[%s7939_s1 + $0x224] ss:$8 sps:$4 sm:$0xff]  }
  0x6d   :  { %2428 = vmatpush1.bf16.msra.mxu1 %v6172_v57  ;;  %1047 = vmatprep.subr.bf16.mxu0 %v6180_v58  ;;  %v6240_v57 = vld [vmem:[%s7939_s1 + $0x524] ss:$8 sps:$4 sm:$0xff]   ;;  %v6235_v58 = vld [vmem:[%s7939_s1 + $0x220] ss:$8 sps:$4 sm:$0xff]  }
  0x6e   :  { %2429 = vmatprep.subr.bf16.mxu1 %v6183_v59  ;;  %v6243_v59 = vld [vmem:[%s7939_s1 + $0x234] ss:$8 sps:$4 sm:$0xff]  }
  0x70   :  { %1048 = vmatpush1.bf16.msra.mxu0 %v6178_v60  ;;  %v6246_v60 = vld [vmem:[%s7939_s1 + $0x534] ss:$8 sps:$4 sm:$0xff]  }
  0x71   :  { %2430 = vmatpush1.bf16.msra.mxu1 %v6181_v61  ;;  %1049 = vmatprep.subr.bf16.mxu0 %v6189_v62  ;;  %v6241_v61 = vld [vmem:[%s7939_s1 + $0x230] ss:$8 sps:$4 sm:$0xff]  }
  0x72   :  { %2431 = vmatprep.subr.bf16.mxu1 %v6192_v63  ;;  %605 = vmatmul.mubr.bf16.gmra.mrb[24].mxu0 %v6974_v0  ;;  %v6244_v62 = vld [vmem:[%s7939_s1 + $0x530] ss:$8 sps:$4 sm:$0xff]   ;;  %v6247_v63 = vld [vmem:[%s7939_s1 + $0x240] ss:$8 sps:$4 sm:$0xff]  }
  0x73   :  { %2147 = vmatmul.mubr.bf16.gmra.mrb[24].mxu1 %v6974_v0  ;;  %614 = vmatprep.mubr.bf16.mxu0 %v6979_v1 }
  0x74   :  { %2156 = vmatprep.mubr.bf16.mxu1 %v6979_v1  ;;  %1050 = vmatpush1.bf16.msra.mxu0 %v6187_v2  ;;  %v6250_v2 = vld [vmem:[%s7939_s1 + $0x540] ss:$8 sps:$4 sm:$0xff]  }
  0x75   :  { %2432 = vmatpush1.bf16.msra.mxu1 %v6190_v4  ;;  %1051 = vmatprep.subr.bf16.mxu0 %v6198_v5  ;;  %v6255_v4 = vld [vmem:[%s7939_s1 + $0x254] ss:$8 sps:$4 sm:$0xff]  }
  0x76   :  { %2433 = vmatprep.subr.bf16.mxu1 %v6201_v7  ;;  %v6258_v5 = vld [vmem:[%s7939_s1 + $0x554] ss:$8 sps:$4 sm:$0xff]   ;;  %v6253_v7 = vld [vmem:[%s7939_s1 + $0x250] ss:$8 sps:$4 sm:$0xff]  }
  0x78   :  { %1052 = vmatpush1.bf16.msra.mxu0 %v6196_v8  ;;  %v6256_v8 = vld [vmem:[%s7939_s1 + $0x550] ss:$8 sps:$4 sm:$0xff]  }
  0x79   :  { %2434 = vmatpush1.bf16.msra.mxu1 %v6199_v9  ;;  %1053 = vmatprep.subr.bf16.mxu0 %v6207_v10  ;;  %v6259_v9 = vld [vmem:[%s7939_s1 + $0x260] ss:$8 sps:$4 sm:$0xff]  }
  0x7a   :  { %2435 = vmatprep.subr.bf16.mxu1 %v6210_v11  ;;  %615 = vmatmul.mubr.bf16.gmra.mrb[28].mxu0 %v7012_v12  ;;  %v6262_v10 = vld [vmem:[%s7939_s1 + $0x560] ss:$8 sps:$4 sm:$0xff]   ;;  %v6267_v11 = vld [vmem:[%s7939_s1 + $0x274] ss:$8 sps:$4 sm:$0xff]  }
  0x7b   :  { %2157 = vmatmul.mubr.bf16.gmra.mrb[28].mxu1 %v7012_v12  ;;  %624 = vmatprep.mubr.bf16.mxu0 %v7017_v15 }
  0x7c   :  { %2166 = vmatprep.mubr.bf16.mxu1 %v7017_v15  ;;  %1054 = vmatpush1.bf16.msra.mxu0 %v6205_v16  ;;  %v6270_v16 = vld [vmem:[%s7939_s1 + $0x574] ss:$8 sps:$4 sm:$0xff]  }
  0x7d   :  { %2436 = vmatpush1.bf16.msra.mxu1 %v6208_v17  ;;  %1055 = vmatprep.subr.bf16.mxu0 %v6216_v18  ;;  %v6265_v17 = vld [vmem:[%s7939_s1 + $0x270] ss:$8 sps:$4 sm:$0xff]  }
  0x7e   :  { %2437 = vmatprep.subr.bf16.mxu1 %v6219_v19  ;;  %v6268_v18 = vld [vmem:[%s7939_s1 + $0x570] ss:$8 sps:$4 sm:$0xff]   ;;  %v6271_v19 = vld [vmem:[%s7939_s1 + $0x280] ss:$8 sps:$4 sm:$0xff]  }
  0x80   :  { %1056 = vmatpush1.bf16.msra.mxu0 %v6214_v20  ;;  %v6274_v20 = vld [vmem:[%s7939_s1 + $0x580] ss:$8 sps:$4 sm:$0xff]  }
  0x81   :  { %2438 = vmatpush1.bf16.msra.mxu1 %v6217_v21  ;;  %1571 = vmatprep.subr.bf16.mxu0 %v6225_v22  ;;  %v6279_v21 = vld [vmem:[%s7939_s1 + $0x294] ss:$8 sps:$4 sm:$0xff]  }
  0x82   :  { %2793 = vmatprep.subr.bf16.mxu1 %v6228_v25  ;;  %625 = vmatmul.mubr.bf16.gmra.mrb[32].mxu0 %v7050_v26  ;;  %v6282_v22 = vld [vmem:[%s7939_s1 + $0x594] ss:$8 sps:$4 sm:$0xff]   ;;  %v6277_v25 = vld [vmem:[%s7939_s1 + $0x290] ss:$8 sps:$4 sm:$0xff]  }
  0x83   :  { %2167 = vmatmul.mubr.bf16.gmra.mrb[32].mxu1 %v7050_v26  ;;  %634 = vmatprep.mubr.bf16.mxu0 %v7055_v27 }
  0x84   :  { %2176 = vmatprep.mubr.bf16.mxu1 %v7055_v27 }
  0x8a   :  { %635 = vmatmul.mubr.bf16.gmra.mrb[36].mxu0 %v7064_v28 }
  0x8b   :  { %2177 = vmatmul.mubr.bf16.gmra.mrb[36].mxu1 %v7064_v28  ;;  %644 = vmatprep.mubr.bf16.mxu0 %v7069_v29 }
  0x8c   :  { %2186 = vmatprep.mubr.bf16.mxu1 %v7069_v29 }
  0x92   :  { %645 = vmatmul.mubr.bf16.gmra.mrb[40].mxu0 %v7078_v30 }
  0x93   :  { %2187 = vmatmul.mubr.bf16.gmra.mrb[40].mxu1 %v7078_v30  ;;  %654 = vmatprep.mubr.bf16.mxu0 %v7083_v31 }
  0x94   :  { %2196 = vmatprep.mubr.bf16.mxu1 %v7083_v31 }
  0x9a   :  { %655 = vmatmul.mubr.bf16.gmra.mrb[44].mxu0 %v7092_v32 }
  0x9b   :  { %2197 = vmatmul.mubr.bf16.gmra.mrb[44].mxu1 %v7092_v32  ;;  %664 = vmatprep.mubr.bf16.mxu0 %v7097_v35 }
  0x9c   :  { %2206 = vmatprep.mubr.bf16.mxu1 %v7097_v35 }
  0xa2   :  { %665 = vmatmul.mubr.bf16.gmra.mrb[48].mxu0 %v7106_v36 }
  0xa3   :  { %2207 = vmatmul.mubr.bf16.gmra.mrb[48].mxu1 %v7106_v36  ;;  %674 = vmatprep.mubr.bf16.mxu0 %v7111_v37 }
  0xa4   :  { %2216 = vmatprep.mubr.bf16.mxu1 %v7111_v37 }
  0xaa   :  { %675 = vmatmul.mubr.bf16.gmra.mrb[52].mxu0 %v7120_v38 }
  0xab   :  { %2217 = vmatmul.mubr.bf16.gmra.mrb[52].mxu1 %v7120_v38  ;;  %684 = vmatprep.mubr.bf16.mxu0 %v7125_v39 }
  0xac   :  { %2226 = vmatprep.mubr.bf16.mxu1 %v7125_v39 }
  0xb2   :  { %685 = vmatmul.mubr.bf16.gmra.mrb[56].mxu0 %v7134_v40 }
  0xb3   :  { %2227 = vmatmul.mubr.bf16.gmra.mrb[56].mxu1 %v7134_v40  ;;  %694 = vmatprep.mubr.bf16.mxu0 %v6211_v41 }
  0xb4   :  { %2236 = vmatprep.mubr.bf16.mxu1 %v6211_v41  ;;  %v6280_v41 = vld [vmem:[%s7939_s1 + $0x590] ss:$8 sps:$4 sm:$0xff]  }
  0xba   :  { %695 = vmatmul.mubr.bf16.gmra.mrb[60].mxu0 %v6213_v42 }
  0xbb   :  { %2237 = vmatmul.mubr.bf16.gmra.mrb[60].mxu1 %v6213_v42  ;;  %1057 = vmatprep.mubr.bf16.mxu0 %v6222_v45  ;;  %v6283_v42 = vld [vmem:[%s7939_s1 + $0x2a0] ss:$8 sps:$4 sm:$0xff]  }
  0xbc   :  { %2439 = vmatprep.mubr.bf16.mxu1 %v6222_v45  ;;  %v6286_v45 = vld [vmem:[%s7939_s1 + $0x5a0] ss:$8 sps:$4 sm:$0xff]  }
  0xc2   :  { %1058 = vmatmul.mubr.bf16.vlgmr.msra.gmra.mrb[0].mxu0 %v6220_v46 }
  0xc3   :  { %2440 = vmatmul.mubr.bf16.vlgmr.msra.gmra.mrb[0].mxu1 %v6220_v46  ;;  %1572 = vmatpush1.bf16.msra.mxu0 %v6223_v47  ;;  %v6291_v46 = vld [vmem:[%s7939_s1 + $0x2b4] ss:$8 sps:$4 sm:$0xff]  }
  0xc4   :  { %2794 = vmatpush1.bf16.msra.mxu1 %v6226_v49  ;;  %1067 = vmatprep.mubr.bf16.mxu0 %v6685_v48  ;;  %v6294_v47 = vld [vmem:[%s7939_s1 + $0x5b4] ss:$8 sps:$4 sm:$0xff]   ;;  %v6289_v49 = vld [vmem:[%s7939_s1 + $0x2b0] ss:$8 sps:$4 sm:$0xff]  }
  0xc5   :  { %2449 = vmatprep.mubr.bf16.mxu1 %v6685_v48  ;;  %1573 = vmatprep.subr.bf16.mxu0 %v6231_v50  ;;  %v6238_v48 = vld [vmem:[%s7939_s1 + $0x520] ss:$8 sps:$4 sm:$0xff]   ;;  %v6292_v50 = vld [vmem:[%s7939_s1 + $0x5b0] ss:$8 sps:$4 sm:$0xff]  }
  0xc6   :  { %2795 = vmatprep.subr.bf16.mxu1 %v6234_v51  ;;  %v6295_v51 = vld [vmem:[%s7939_s1 + $0x2c0] ss:$8 sps:$4 sm:$0xff]  }
  0xc7   :  { %1574 = vmatpush1.bf16.msra.mxu0 %v6229_v52  ;;  %v6298_v52 = vld [vmem:[%s7939_s1 + $0x5c0] ss:$8 sps:$4 sm:$0xff]  }
  0xc8   :  { %2796 = vmatpush1.bf16.msra.mxu1 %v6232_v53  ;;  %1575 = vmatprep.subr.bf16.mxu0 %v6237_v56  ;;  %v6303_v53 = vld [vmem:[%s7939_s1 + $0x2d4] ss:$8 sps:$4 sm:$0xff]  }
  0xc9   :  { %2797 = vmatprep.subr.bf16.mxu1 %v6240_v57  ;;  %v6306_v56 = vld [vmem:[%s7939_s1 + $0x5d4] ss:$8 sps:$4 sm:$0xff]   ;;  %v6301_v57 = vld [vmem:[%s7939_s1 + $0x2d0] ss:$8 sps:$4 sm:$0xff]  }
  0xca   :  { %1068 = vmatmul.mubr.bf16.gmra.mrb[4].mxu0 %v6746_v3 }
  0xcb   :  { %2450 = vmatmul.mubr.bf16.gmra.mrb[4].mxu1 %v6746_v3  ;;  %1077 = vmatprep.mubr.bf16.mxu0 %v6757_v6  ;;  %v6249_v3 = vld [vmem:[%s7939_s1 + $0x244] ss:$8 sps:$4 sm:$0xff]  }
  0xcc   :  { %2459 = vmatprep.mubr.bf16.mxu1 %v6757_v6  ;;  %1576 = vmatpush1.bf16.msra.mxu0 %v6235_v58  ;;  %v6252_v6 = vld [vmem:[%s7939_s1 + $0x544] ss:$8 sps:$4 sm:$0xff]   ;;  %v6304_v58 = vld [vmem:[%s7939_s1 + $0x5d0] ss:$8 sps:$4 sm:$0xff]  }
  0xcd   :  { %2798 = vmatpush1.bf16.msra.mxu1 %v6238_v48  ;;  %1577 = vmatprep.subr.bf16.mxu0 %v6243_v59  ;;  %v6307_v48 = vld [vmem:[%s7939_s1 + $0x2e0] ss:$8 sps:$4 sm:$0xff]  }
  0xce   :  { %2799 = vmatprep.subr.bf16.mxu1 %v6246_v60  ;;  %v6310_v59 = vld [vmem:[%s7939_s1 + $0x5e0] ss:$8 sps:$4 sm:$0xff]   ;;  %v6315_v60 = vld [vmem:[%s7939_s1 + $0x2f4] ss:$8 sps:$4 sm:$0xff]  }
  0xd0   :  { %1578 = vmatpush1.bf16.msra.mxu0 %v6241_v61  ;;  %v6318_v61 = vld [vmem:[%s7939_s1 + $0x5f4] ss:$8 sps:$4 sm:$0xff]  }
  0xd1   :  { %2800 = vmatpush1.bf16.msra.mxu1 %v6244_v62  ;;  %1579 = vmatprep.subr.bf16.mxu0 %v6249_v3  ;;  %v6313_v62 = vld [vmem:[%s7939_s1 + $0x2f0] ss:$8 sps:$4 sm:$0xff]  }
  0xd2   :  { %2801 = vmatprep.subr.bf16.mxu1 %v6252_v6  ;;  %1078 = vmatmul.mubr.bf16.gmra.mrb[8].mxu0 %v6784_v13  ;;  %v6316_v3 = vld [vmem:[%s7939_s1 + $0x5f0] ss:$8 sps:$4 sm:$0xff]  }
  0xd3   :  { %2460 = vmatmul.mubr.bf16.gmra.mrb[8].mxu1 %v6784_v13  ;;  %1087 = vmatprep.mubr.bf16.mxu0 %v6789_v14  ;;  %v6261_v13 = vld [vmem:[%s7939_s1 + $0x264] ss:$8 sps:$4 sm:$0xff]   ;;  %v6361_v6 = vld [vmem:[%s7941_s3 + $0xd8] sm:$0xff]  }
  0xd4   :  { %2469 = vmatprep.mubr.bf16.mxu1 %v6789_v14  ;;  %1580 = vmatpush1.bf16.msra.mxu0 %v6247_v63  ;;  %v6264_v14 = vld [vmem:[%s7939_s1 + $0x564] ss:$8 sps:$4 sm:$0xff]   ;;  %v6363_v63 = vld [vmem:[%s7941_s3 + $0x58] sm:$0xff]  }
  0xd5   :  { %2802 = vmatpush1.bf16.msra.mxu1 %v6250_v2  ;;  %1581 = vmatprep.subr.bf16.mxu0 %v6255_v4  ;;  %v6362_v2 = vld [vmem:[%s7941_s3 + $0x98] sm:$0xff]  }
  0xd6   :  { %2803 = vmatprep.subr.bf16.mxu1 %v6258_v5  ;;  %v6364_v4 = vld [vmem:[%s7941_s3 + $0x18] sm:$0xff]   ;;  %v6327_v5 = vld [vmem:[%s7940_s0 + $0x40] ss:$8 sps:$4 sm:$0xff]  }
  0xd8   :  { %1582 = vmatpush1.bf16.msra.mxu0 %v6253_v7  ;;  %v6365_v7 = vld [vmem:[%s7941_s3 + $0xe0] sm:$0xff]  }
  0xd9   :  { %2804 = vmatpush1.bf16.msra.mxu1 %v6256_v8  ;;  %1583 = vmatprep.subr.bf16.mxu0 %v6261_v13  ;;  %v6328_v8 = vld [vmem:[%s7940_s0 + $0x54] ss:$8 sps:$4 sm:$0xff]   ;;  %v6367_v13 = vld [vmem:[%s7941_s3 + $0x60] sm:$0xff]  }
  0xda   :  { %2805 = vmatprep.subr.bf16.mxu1 %v6264_v14  ;;  %1088 = vmatmul.mubr.bf16.gmra.mrb[12].mxu0 %v6822_v23  ;;  %v6366_v14 = vld [vmem:[%s7941_s3 + $0xa0] sm:$0xff]  }
  0xdb   :  { %2470 = vmatmul.mubr.bf16.gmra.mrb[12].mxu1 %v6822_v23  ;;  %1097 = vmatprep.mubr.bf16.mxu0 %v6827_v24  ;;  %v6273_v23 = vld [vmem:[%s7939_s1 + $0x284] ss:$8 sps:$4 sm:$0xff]  }
  0xdc   :  { %2479 = vmatprep.mubr.bf16.mxu1 %v6827_v24  ;;  %1584 = vmatpush1.bf16.msra.mxu0 %v6259_v9  ;;  %v6276_v24 = vld [vmem:[%s7939_s1 + $0x584] ss:$8 sps:$4 sm:$0xff]  }
  0xdd   :  { %2806 = vmatpush1.bf16.msra.mxu1 %v6262_v10  ;;  %1585 = vmatprep.subr.bf16.mxu0 %v6267_v11  ;;  %v6368_v9 = vld [vmem:[%s7941_s3 + $0x20] sm:$0xff]   ;;  %v6369_v10 = vld [vmem:[%s7941_s3 + $0xe8] sm:$0xff]  }
  0xde   :  { %2807 = vmatprep.subr.bf16.mxu1 %v6270_v16  ;;  %v6371_v11 = vld [vmem:[%s7941_s3 + $0x68] sm:$0xff]  }
  0xdf   :  { %v6370_v16 = vld [vmem:[%s7941_s3 + $0xa8] sm:$0xff]  }
  0xe0   :  { %1586 = vmatpush1.bf16.msra.mxu0 %v6265_v17  ;;  %v6372_v17 = vld [vmem:[%s7941_s3 + $0x28] sm:$0xff]  }
  0xe1   :  { %2808 = vmatpush1.bf16.msra.mxu1 %v6268_v18  ;;  %1587 = vmatprep.subr.bf16.mxu0 %v6273_v23  ;;  %v6330_v18 = vld [vmem:[%s7940_s0 + $0x50] ss:$8 sps:$4 sm:$0xff]   ;;  %v6331_v23 = vld [vmem:[%s7940_s0 + $0x64] ss:$8 sps:$4 sm:$0xff]  }
  0xe2   :  { %2809 = vmatprep.subr.bf16.mxu1 %v6276_v24  ;;  %1098 = vmatmul.mubr.bf16.gmra.mrb[16].mxu0 %v6860_v33  ;;  %v6333_v24 = vld [vmem:[%s7940_s0 + $0x60] ss:$8 sps:$4 sm:$0xff]  }
  0xe3   :  { %2480 = vmatmul.mubr.bf16.gmra.mrb[16].mxu1 %v6860_v33  ;;  %1107 = vmatprep.mubr.bf16.mxu0 %v6865_v34  ;;  %v6285_v33 = vld [vmem:[%s7939_s1 + $0x2a4] ss:$8 sps:$4 sm:$0xff]  }
  0xe4   :  { %2489 = vmatprep.mubr.bf16.mxu1 %v6865_v34  ;;  %1588 = vmatpush1.bf16.msra.mxu0 %v6271_v19  ;;  %v6288_v34 = vld [vmem:[%s7939_s1 + $0x5a4] ss:$8 sps:$4 sm:$0xff]   ;;  %v6334_v19 = vld [vmem:[%s7940_s0 + $0x74] ss:$8 sps:$4 sm:$0xff]  }
  0xe5   :  { %2810 = vmatpush1.bf16.msra.mxu1 %v6274_v20  ;;  %1589 = vmatprep.subr.bf16.mxu0 %v6279_v21  ;;  %v6336_v20 = vld [vmem:[%s7940_s0 + $0x70] ss:$8 sps:$4 sm:$0xff]   ;;  %v6337_v21 = vld [vmem:[%s7940_s0 + $0x84] ss:$8 sps:$4 sm:$0xff]  }
  0xe6   :  { %2811 = vmatprep.subr.bf16.mxu1 %v6282_v22  ;;  %v6339_v22 = vld [vmem:[%s7940_s0 + $0x80] ss:$8 sps:$4 sm:$0xff]  }
  0xe8   :  { %1590 = vmatpush1.bf16.msra.mxu0 %v6277_v25  ;;  %v6340_v25 = vld [vmem:[%s7940_s0 + $0x94] ss:$8 sps:$4 sm:$0xff]  }
  0xe9   :  { %2812 = vmatpush1.bf16.msra.mxu1 %v6280_v41  ;;  %1591 = vmatprep.subr.bf16.mxu0 %v6285_v33  ;;  %v6342_v41 = vld [vmem:[%s7940_s0 + $0x90] ss:$8 sps:$4 sm:$0xff]   ;;  %v6343_v33 = vld [vmem:[%s7940_s0 + $0xa4] ss:$8 sps:$4 sm:$0xff]  }
  0xea   :  { %2813 = vmatprep.subr.bf16.mxu1 %v6288_v34  ;;  %1108 = vmatmul.mubr.bf16.gmra.mrb[20].mxu0 %v6898_v43  ;;  %v6345_v34 = vld [vmem:[%s7940_s0 + $0xa0] ss:$8 sps:$4 sm:$0xff]  }
  0xeb   :  { %2490 = vmatmul.mubr.bf16.gmra.mrb[20].mxu1 %v6898_v43  ;;  %1117 = vmatprep.mubr.bf16.mxu0 %v6903_v44  ;;  %v6297_v43 = vld [vmem:[%s7939_s1 + $0x2c4] ss:$8 sps:$4 sm:$0xff]  }
  0xec   :  { %2499 = vmatprep.mubr.bf16.mxu1 %v6903_v44  ;;  %1592 = vmatpush1.bf16.msra.mxu0 %v6283_v42  ;;  %v6300_v44 = vld [vmem:[%s7939_s1 + $0x5c4] ss:$8 sps:$4 sm:$0xff]   ;;  %v6485_v42 = vld [vmem:[%s7940_s0 + $0xb4] ss:$8 sps:$4 sm:$0xff]  }
  0xed   :  { %2814 = vmatpush1.bf16.msra.mxu1 %v6286_v45  ;;  %1593 = vmatprep.subr.bf16.mxu0 %v6291_v46  ;;  %v6486_v45 = vld [vmem:[%s7940_s0 + $0xb0] ss:$8 sps:$4 sm:$0xff]   ;;  %v6487_v46 = vld [vmem:[%s7940_s0 + $0xc4] ss:$8 sps:$4 sm:$0xff]  }
  0xee   :  { %2815 = vmatprep.subr.bf16.mxu1 %v6294_v47  ;;  %v6488_v47 = vld [vmem:[%s7940_s0 + $0xc0] ss:$8 sps:$4 sm:$0xff]  }
  0xf0   :  { %1594 = vmatpush1.bf16.msra.mxu0 %v6289_v49  ;;  %v6489_v49 = vld [vmem:[%s7940_s0 + $0xd4] ss:$8 sps:$4 sm:$0xff]  }
  0xf1   :  { %2816 = vmatpush1.bf16.msra.mxu1 %v6292_v50  ;;  %1595 = vmatprep.subr.bf16.mxu0 %v6297_v43  ;;  %v6373_v50 = vld [vmem:[%s7941_s3 + $0xf0] sm:$0xff]  }
  0xf2   :  { %2817 = vmatprep.subr.bf16.mxu1 %v6300_v44  ;;  %1118 = vmatmul.mubr.bf16.gmra.mrb[24].mxu0 %v6936_v54  ;;  %v6490_v43 = vld [vmem:[%s7940_s0 + $0xd0] ss:$8 sps:$4 sm:$0xff]   ;;  %v6491_v44 = vld [vmem:[%s7940_s0 + $0xe4] ss:$8 sps:$4 sm:$0xff]  }
  0xf3   :  { %2500 = vmatmul.mubr.bf16.gmra.mrb[24].mxu1 %v6936_v54  ;;  %1127 = vmatprep.mubr.bf16.mxu0 %v6941_v55  ;;  %v6309_v54 = vld [vmem:[%s7939_s1 + $0x2e4] ss:$8 sps:$4 sm:$0xff]  }
  0xf4   :  { %2509 = vmatprep.mubr.bf16.mxu1 %v6941_v55  ;;  %1596 = vmatpush1.bf16.msra.mxu0 %v6295_v51  ;;  %v6312_v55 = vld [vmem:[%s7939_s1 + $0x5e4] ss:$8 sps:$4 sm:$0xff]   ;;  %v6492_v51 = vld [vmem:[%s7940_s0 + $0xe0] ss:$8 sps:$4 sm:$0xff]  }
  0xf5   :  { %2818 = vmatpush1.bf16.msra.mxu1 %v6298_v52  ;;  %1597 = vmatprep.subr.bf16.mxu0 %v6303_v53  ;;  %v6375_v52 = vld [vmem:[%s7941_s3 + $0x70] sm:$0xff]  }
  0xf6   :  { %2819 = vmatprep.subr.bf16.mxu1 %v6306_v56  ;;  %v6493_v53 = vld [vmem:[%s7940_s0 + $0xf4] ss:$8 sps:$4 sm:$0xff]  }
  0xf7   :  { %v6376_v56 = vld [vmem:[%s7941_s3 + $0x30] sm:$0xff]  }
  0xf8   :  { %1598 = vmatpush1.bf16.msra.mxu0 %v6301_v57  ;;  %v6374_v57 = vld [vmem:[%s7941_s3 + $0xb0] sm:$0xff]  }
  0xf9   :  { %2820 = vmatpush1.bf16.msra.mxu1 %v6304_v58  ;;  %1599 = vmatprep.subr.bf16.mxu0 %v6309_v54  ;;  %v6377_v58 = vld [vmem:[%s7941_s3 + $0x78] sm:$0xff]  }
  0xfa   :  { %2821 = vmatprep.subr.bf16.mxu1 %v6312_v55  ;;  %1128 = vmatmul.mubr.bf16.gmra.mrb[28].mxu0 %v6974_v0  ;;  %v6378_v54 = vld [vmem:[%s7941_s3 + $0x38] sm:$0xff]  }
  0xfb   :  { %2510 = vmatmul.mubr.bf16.gmra.mrb[28].mxu1 %v6974_v0  ;;  %1137 = vmatprep.mubr.bf16.mxu0 %v6979_v1  ;;  %v6321_v0 = vld [vmem:[%s7940_s0 + $0x24] ss:$8 sps:$4 sm:$0xff]   ;;  %v6494_v55 = vld [vmem:[%s7940_s0 + $0xf0] ss:$8 sps:$4 sm:$0xff]  }
  0xfc   :  { %2519 = vmatprep.mubr.bf16.mxu1 %v6979_v1  ;;  %1600 = vmatpush1.bf16.msra.mxu0 %v6307_v48  ;;  %v6349_v1 = vld [vmem:[%s7941_s3 + $0xc0] sm:$0xff]  }
  0xfd   :  { %2822 = vmatpush1.bf16.msra.mxu1 %v6310_v59  ;;  %1601 = vmatprep.subr.bf16.mxu0 %v6315_v60  ;;  %v6495_v48 = vld [vmem:[%s7940_s0 + $0x104] ss:$8 sps:$4 sm:$0xff]   ;;  %v6379_v59 = vld [vmem:[%s7941_s3 + $0xf8] sm:$0xff]  }
  0xfe   :  { %2823 = vmatprep.subr.bf16.mxu1 %v6318_v61  ;;  %v6346_v60 = vld [vmem:[%s7940_s0 + $0x114] ss:$8 sps:$4 sm:$0xff]   ;;  %v6496_v61 = vld [vmem:[%s7940_s0 + $0x100] ss:$8 sps:$4 sm:$0xff]  }
 0x100   :  { %1602 = vmatpush1.bf16.msra.mxu0 %v6313_v62  ;;  %v6380_v62 = vld [vmem:[%s7941_s3 + $0xb8] sm:$0xff]  }
 0x101   :  { %2824 = vmatpush1.bf16.msra.mxu1 %v6316_v3  ;;  %5545 = vmatprep.subr.bf16.mxu0 %v6349_v1  ;;  %v6348_v3 = vld [vmem:[%s7940_s0 + $0x110] ss:$8 sps:$4 sm:$0xff]   ;;  %v6383_v1 = vld [vmem:[%s7941_s3 + $0x1c0] sm:$0xff]  }
 0x102   :  { %1138 = vmatmul.mubr.bf16.gmra.mrb[32].mxu0 %v7012_v12 }
 0x103   :  { %2520 = vmatmul.mubr.bf16.gmra.mrb[32].mxu1 %v7012_v12  ;;  %1147 = vmatprep.mubr.bf16.mxu0 %v7017_v15  ;;  %v6319_v12 = vld [vmem:[%s7940_s0 + $0x20] ss:$8 sps:$4 sm:$0xff]  }
 0x104   :  { %2529 = vmatprep.mubr.bf16.mxu1 %v7017_v15  ;;  %v6322_v15 = vld [vmem:[%s7940_s0 + $0x34] ss:$8 sps:$4 sm:$0xff]  }
 0x10a   :  { %1148 = vmatmul.mubr.bf16.gmra.mrb[36].mxu0 %v7050_v26 }
 0x10b   :  { %2530 = vmatmul.mubr.bf16.gmra.mrb[36].mxu1 %v7050_v26  ;;  %1157 = vmatprep.mubr.bf16.mxu0 %v7055_v27  ;;  %v6351_v26 = vld [vmem:[%s7941_s3 + $0x40] sm:$0xff]  }
 0x10c   :  { %2539 = vmatprep.mubr.bf16.mxu1 %v7055_v27  ;;  %v6350_v27 = vld [vmem:[%s7941_s3 + $0x80] sm:$0xff]   ;;  %5567 = vmatprep.subr.bf16.mxu1 %v6351_v26 }
 0x112   :  { %1158 = vmatmul.mubr.bf16.gmra.mrb[40].mxu0 %v7064_v28 }
 0x113   :  { %2540 = vmatmul.mubr.bf16.gmra.mrb[40].mxu1 %v7064_v28  ;;  %1167 = vmatprep.mubr.bf16.mxu0 %v7069_v29  ;;  %v6352_v28 = vld [vmem:[%s7941_s3] sm:$0xff]  }
 0x114   :  { %2549 = vmatprep.mubr.bf16.mxu1 %v7069_v29  ;;  %v6353_v29 = vld [vmem:[%s7941_s3 + $0xc8] sm:$0xff]  }
 0x11a   :  { %1168 = vmatmul.mubr.bf16.gmra.mrb[44].mxu0 %v7078_v30 }
 0x11b   :  { %2550 = vmatmul.mubr.bf16.gmra.mrb[44].mxu1 %v7078_v30  ;;  %1177 = vmatprep.mubr.bf16.mxu0 %v7083_v31  ;;  %v6355_v30 = vld [vmem:[%s7941_s3 + $0x48] sm:$0xff]  }
 0x11c   :  { %2559 = vmatprep.mubr.bf16.mxu1 %v7083_v31  ;;  %v6354_v31 = vld [vmem:[%s7941_s3 + $0x88] sm:$0xff]  }
 0x122   :  { %1178 = vmatmul.mubr.bf16.gmra.mrb[48].mxu0 %v7092_v32 }
 0x123   :  { %2560 = vmatmul.mubr.bf16.gmra.mrb[48].mxu1 %v7092_v32  ;;  %1187 = vmatprep.mubr.bf16.mxu0 %v7097_v35  ;;  %v6356_v32 = vld [vmem:[%s7941_s3 + $0x8] sm:$0xff]  }
 0x124   :  { %2569 = vmatprep.mubr.bf16.mxu1 %v7097_v35  ;;  %v6324_v35 = vld [vmem:[%s7940_s0 + $0x30] ss:$8 sps:$4 sm:$0xff]  }
 0x12a   :  { %1188 = vmatmul.mubr.bf16.gmra.mrb[52].mxu0 %v7106_v36 }
 0x12b   :  { %2570 = vmatmul.mubr.bf16.gmra.mrb[52].mxu1 %v7106_v36  ;;  %1197 = vmatprep.mubr.bf16.mxu0 %v7111_v37  ;;  %v6357_v36 = vld [vmem:[%s7941_s3 + $0xd0] sm:$0xff]  }
 0x12c   :  { %2579 = vmatprep.mubr.bf16.mxu1 %v7111_v37  ;;  %v6325_v37 = vld [vmem:[%s7940_s0 + $0x44] ss:$8 sps:$4 sm:$0xff]  }
 0x132   :  { %1198 = vmatmul.mubr.bf16.gmra.mrb[56].mxu0 %v7120_v38 }
 0x133   :  { %2580 = vmatmul.mubr.bf16.gmra.mrb[56].mxu1 %v7120_v38  ;;  %1207 = vmatprep.mubr.bf16.mxu0 %v7125_v39  ;;  %v6359_v38 = vld [vmem:[%s7941_s3 + $0x50] sm:$0xff]  }
 0x134   :  { %2589 = vmatprep.mubr.bf16.mxu1 %v7125_v39  ;;  %v6358_v39 = vld [vmem:[%s7941_s3 + $0x90] sm:$0xff]  }
 0x13a   :  { %1208 = vmatmul.mubr.bf16.gmra.mrb[60].mxu0 %v7134_v40 }
 0x13b   :  { %2590 = vmatmul.mubr.bf16.gmra.mrb[60].mxu1 %v7134_v40  ;;  %1603 = vmatprep.mubr.bf16.mxu0 %v6321_v0  ;;  %v6360_v40 = vld [vmem:[%s7941_s3 + $0x10] sm:$0xff]  }
 0x13c   :  { %2825 = vmatprep.mubr.bf16.mxu1 %v6321_v0  ;;  %v6381_v0 = vld [vmem:[%s7941_s3 + $0x140] sm:$0xff]  }
 0x142   :  { %1604 = vmatmul.mubr.bf16.vlgmr.msra.gmra.mrb[0].mxu0 %v6319_v12 }
 0x143   :  { %2826 = vmatmul.mubr.bf16.vlgmr.msra.gmra.mrb[0].mxu1 %v6319_v12  ;;  %1613 = vmatprep.mubr.bf16.mxu0 %v6322_v15  ;;  %v3148_v12 = vlaneseq }
 0x144   :  { %2835 = vmatprep.mubr.bf16.mxu1 %v6322_v15  ;;  %5546 = vmatpush3.bf16.msra.mxu0 %v6350_v27 }
 0x145   :  { %5568 = vmatpush3.bf16.msra.mxu1 %v6352_v28  ;;  %5547 = vmatprep.subr.bf16.mxu0 %v6353_v29 }
 0x146   :  { %5569 = vmatprep.subr.bf16.mxu1 %v6355_v30  ;;  %v3149_v30 = vshrl.u32 %v3148_v12, 7 }
 0x148   :  { %5548 = vmatpush3.bf16.msra.mxu0 %v6354_v31 }
 0x149   :  { %5570 = vmatpush3.bf16.msra.mxu1 %v6356_v32  ;;  %5549 = vmatprep.subr.bf16.mxu0 %v6357_v36 }
 0x14a   :  { %5571 = vmatprep.subr.bf16.mxu1 %v6359_v38  ;;  %1614 = vmatmul.mubr.bf16.gmra.mrb[4].mxu0 %v6324_v35 }
 0x14b   :  { %2836 = vmatmul.mubr.bf16.gmra.mrb[4].mxu1 %v6324_v35  ;;  %1623 = vmatprep.mubr.bf16.mxu0 %v6325_v37 }
 0x14c   :  { %2845 = vmatprep.mubr.bf16.mxu1 %v6325_v37  ;;  %5550 = vmatpush3.bf16.msra.mxu0 %v6358_v39 }
 0x14d   :  { %5572 = vmatpush3.bf16.msra.mxu1 %v6360_v40  ;;  %5551 = vmatprep.subr.bf16.mxu0 %v6361_v6  ;;  %v3150_v40 = vsub.s32 0, %v3149_v30  ;;  %v3146_v6 = vld [vmem:[%s7942_s2] sm:$0x3] }
 0x14e   :  { %5573 = vmatprep.subr.bf16.mxu1 %v6363_v63  ;;  %v3154_v63 = vsub.s32 1, %v3149_v30 }
 0x150   :  { %5552 = vmatpush3.bf16.msra.mxu0 %v6362_v2 }
 0x151   :  { %5574 = vmatpush3.bf16.msra.mxu1 %v6364_v4  ;;  %5553 = vmatprep.subr.bf16.mxu0 %v6365_v7  ;;  %v7597_v7 = vrot.slane %v3146_v6, %v3150_v40  ;;  %v6395_v40 = vld [vmem:[%s7941_s3 + $0x1d8] sm:$0xff]  }
 0x152   :  { %5575 = vmatprep.subr.bf16.mxu1 %v6367_v13  ;;  %1624 = vmatmul.mubr.bf16.gmra.mrb[8].mxu0 %v6327_v5 }
 0x153   :  { %2846 = vmatmul.mubr.bf16.gmra.mrb[8].mxu1 %v6327_v5  ;;  %1633 = vmatprep.mubr.bf16.mxu0 %v6328_v8 }
 0x154   :  { %2855 = vmatprep.mubr.bf16.mxu1 %v6328_v8  ;;  %5554 = vmatpush3.bf16.msra.mxu0 %v6366_v14 }
 0x155   :  { %5576 = vmatpush3.bf16.msra.mxu1 %v6368_v9  ;;  %5555 = vmatprep.subr.bf16.mxu0 %v6369_v10  ;;  %v7599_v9 = vrot.slane %v3146_v6, %v3154_v63 }
 0x156   :  { %5577 = vmatprep.subr.bf16.mxu1 %v6371_v11 }
 0x158   :  { %5556 = vmatpush3.bf16.msra.mxu0 %v6370_v16 }
 0x159   :  { %5578 = vmatpush3.bf16.msra.mxu1 %v6372_v17  ;;  %5557 = vmatprep.subr.bf16.mxu0 %v6373_v50 }
 0x15a   :  { %1634 = vmatmul.mubr.bf16.gmra.mrb[12].mxu0 %v6330_v18  ;;  %5579 = vmatprep.subr.bf16.mxu1 %v6375_v52 }
 0x15b   :  { %2856 = vmatmul.mubr.bf16.gmra.mrb[12].mxu1 %v6330_v18  ;;  %1643 = vmatprep.mubr.bf16.mxu0 %v6331_v23 }
 0x15c   :  { %2865 = vmatprep.mubr.bf16.mxu1 %v6331_v23  ;;  %5558 = vmatpush3.bf16.msra.mxu0 %v6374_v57 }
 0x15d   :  { %5580 = vmatpush3.bf16.msra.mxu1 %v6376_v56  ;;  %5559 = vmatprep.subr.bf16.mxu0 %v6379_v59  ;;  %v6384_v59 = vld [vmem:[%s7941_s3 + $0x180] sm:$0xff]  }
 0x15e   :  { %5581 = vmatprep.subr.bf16.mxu1 %v6377_v58 }
 0x160   :  { %5560 = vmatpush3.bf16.msra.mxu0 %v6380_v62 }
 0x161   :  { %5582 = vmatpush3.bf16.msra.mxu1 %v6378_v54  ;;  %5589 = vmatprep.subr.bf16.mxu0 %v6381_v0 }
 0x162   :  { %1644 = vmatmul.mubr.bf16.gmra.mrb[16].mxu0 %v6333_v24  ;;  %5611 = vmatprep.subr.bf16.mxu1 %v6383_v1 }
 0x163   :  { %2866 = vmatmul.mubr.bf16.gmra.mrb[16].mxu1 %v6333_v24  ;;  %1653 = vmatprep.mubr.bf16.mxu0 %v6334_v19 }
 0x164   :  { %2875 = vmatprep.mubr.bf16.mxu1 %v6334_v19 }
 0x16a   :  { %1654 = vmatmul.mubr.bf16.gmra.mrb[20].mxu0 %v6336_v20 }
 0x16b   :  { %2876 = vmatmul.mubr.bf16.gmra.mrb[20].mxu1 %v6336_v20  ;;  %1663 = vmatprep.mubr.bf16.mxu0 %v6337_v21 }
 0x16c   :  { %2885 = vmatprep.mubr.bf16.mxu1 %v6337_v21 }
 0x172   :  { %1664 = vmatmul.mubr.bf16.gmra.mrb[24].mxu0 %v6339_v22 }
 0x173   :  { %2886 = vmatmul.mubr.bf16.gmra.mrb[24].mxu1 %v6339_v22  ;;  %1673 = vmatprep.mubr.bf16.mxu0 %v6340_v25 }
 0x174   :  { %2895 = vmatprep.mubr.bf16.mxu1 %v6340_v25 }
 0x17a   :  { %1674 = vmatmul.mubr.bf16.gmra.mrb[28].mxu0 %v6342_v41 }
 0x17b   :  { %2896 = vmatmul.mubr.bf16.gmra.mrb[28].mxu1 %v6342_v41  ;;  %1683 = vmatprep.mubr.bf16.mxu0 %v6343_v33 }
 0x17c   :  { %2905 = vmatprep.mubr.bf16.mxu1 %v6343_v33 }
 0x182   :  { %1684 = vmatmul.mubr.bf16.gmra.mrb[32].mxu0 %v6345_v34 }
 0x183   :  { %2906 = vmatmul.mubr.bf16.gmra.mrb[32].mxu1 %v6345_v34  ;;  %1693 = vmatprep.mubr.bf16.mxu0 %v6485_v42 }
 0x184   :  { %2915 = vmatprep.mubr.bf16.mxu1 %v6485_v42 }
 0x18a   :  { %1694 = vmatmul.mubr.bf16.gmra.mrb[36].mxu0 %v6486_v45 }
 0x18b   :  { %2916 = vmatmul.mubr.bf16.gmra.mrb[36].mxu1 %v6486_v45  ;;  %1703 = vmatprep.mubr.bf16.mxu0 %v6487_v46 }
 0x18c   :  { %2925 = vmatprep.mubr.bf16.mxu1 %v6487_v46 }
 0x192   :  { %1704 = vmatmul.mubr.bf16.gmra.mrb[40].mxu0 %v6488_v47 }
 0x193   :  { %2926 = vmatmul.mubr.bf16.gmra.mrb[40].mxu1 %v6488_v47  ;;  %1713 = vmatprep.mubr.bf16.mxu0 %v6489_v49 }
 0x194   :  { %2935 = vmatprep.mubr.bf16.mxu1 %v6489_v49 }
 0x19a   :  { %1714 = vmatmul.mubr.bf16.gmra.mrb[44].mxu0 %v6490_v43 }
 0x19b   :  { %2936 = vmatmul.mubr.bf16.gmra.mrb[44].mxu1 %v6490_v43  ;;  %1723 = vmatprep.mubr.bf16.mxu0 %v6491_v44 }
 0x19c   :  { %2945 = vmatprep.mubr.bf16.mxu1 %v6491_v44 }
 0x1a2   :  { %1724 = vmatmul.mubr.bf16.gmra.mrb[48].mxu0 %v6492_v51 }
 0x1a3   :  { %2946 = vmatmul.mubr.bf16.gmra.mrb[48].mxu1 %v6492_v51  ;;  %1733 = vmatprep.mubr.bf16.mxu0 %v6493_v53 }
 0x1a4   :  { %2955 = vmatprep.mubr.bf16.mxu1 %v6493_v53 }
 0x1aa   :  { %1734 = vmatmul.mubr.bf16.gmra.mrb[52].mxu0 %v6494_v55 }
 0x1ab   :  { %2956 = vmatmul.mubr.bf16.gmra.mrb[52].mxu1 %v6494_v55  ;;  %1743 = vmatprep.mubr.bf16.mxu0 %v6495_v48 }
 0x1ac   :  { %2965 = vmatprep.mubr.bf16.mxu1 %v6495_v48 }
 0x1b2   :  { %1744 = vmatmul.mubr.bf16.gmra.mrb[56].mxu0 %v6496_v61 }
 0x1b3   :  { %2966 = vmatmul.mubr.bf16.gmra.mrb[56].mxu1 %v6496_v61  ;;  %1753 = vmatprep.mubr.bf16.mxu0 %v6346_v60 }
 0x1b4   :  { %2975 = vmatprep.mubr.bf16.mxu1 %v6346_v60  ;;  %v6387_v60 = vld [vmem:[%s7941_s3 + $0x1c8] sm:$0xff]  }
 0x1ba   :  { %1754 = vmatmul.mubr.bf16.gmra.mrb[60].mxu0 %v6348_v3 }
 0x1bb   :  { %2976 = vmatmul.mubr.bf16.gmra.mrb[60].mxu1 %v6348_v3  ;;  %v6388_v3 = vld [vmem:[%s7941_s3 + $0x188] sm:$0xff]  }
 0x215   :  { %v1605_v15 = vpop.f32.mrb[0].mxu0 }
 0x216   :  { %v2827_v26 = vpop.f32.mrb[0].mxu1  ;;  %v1607_v28 = vpop.f32.mrb[1].mxu0 }
 0x217   :  { %v3050_v27 = vmax.f32 %v1605_v15, %v2827_v26  ;;  %v2829_v29 = vpop.f32.mrb[1].mxu1  ;;  %v1609_v32 = vpop.f32.mrb[2].mxu0  ;;  %v6391_v15 = vld [vmem:[%s7941_s3 + $0x1d0] sm:$0xff]  }
 0x218   :  { %v3051_v31 = vmax.f32 %v1607_v28, %v2829_v29  ;;  %v2831_v35 = vpop.f32.mrb[2].mxu1  ;;  %v1611_v37 = vpop.f32.mrb[3].mxu0 }
 0x219   :  { %v3052_v36 = vmax.f32 %v1609_v32, %v2831_v35  ;;  %v2833_v38 = vpop.f32.mrb[3].mxu1 }
 0x21a   :  { %v3053_v39 = vmax.f32 %v1611_v37, %v2833_v38  ;;  %v6392_v37 = vld [vmem:[%s7941_s3 + $0x190] sm:$0xff]  }
 0x21d   :  { %v1615_v2 = vpop.f32.mrb[4].mxu0 }
 0x21e   :  { %v2837_v4 = vpop.f32.mrb[4].mxu1  ;;  %v1617_v8 = vpop.f32.mrb[5].mxu0 }
 0x21f   :  { %v3054_v5 = vmax.f32 %v1615_v2, %v2837_v4  ;;  %v2839_v13 = vpop.f32.mrb[5].mxu1  ;;  %v1619_v10 = vpop.f32.mrb[6].mxu0 }
 0x220   :  { %v3055_v14 = vmax.f32 %v1617_v8, %v2839_v13  ;;  %v2841_v11 = vpop.f32.mrb[6].mxu1  ;;  %v1621_v18 = vpop.f32.mrb[7].mxu0  ;;  %v6396_v13 = vld [vmem:[%s7941_s3 + $0x198] sm:$0xff]  }
 0x221   :  { %v3114_v16 = vmax.f32 %v3050_v27, %v3054_v5  ;;  %v3056_v17 = vmax.f32 %v1619_v10, %v2841_v11  ;;  %v2843_v23 = vpop.f32.mrb[7].mxu1 }
 0x222   :  { %v3115_v24 = vmax.f32 %v3051_v31, %v3055_v14  ;;  %v3057_v19 = vmax.f32 %v1621_v18, %v2843_v23  ;;  %v6399_v18 = vld [vmem:[%s7941_s3 + $0x1e0] sm:$0xff]  }
 0x223   :  { %v3158_v20 = vadd.f32 %v7597_v7, %v3114_v16  ;;  %v3116_v21 = vmax.f32 %v3052_v36, %v3056_v17 }
 0x224   :  { %v3159_v22 = vadd.f32 %v7599_v9, %v3115_v24  ;;  %v3117_v25 = vmax.f32 %v3053_v39, %v3057_v19 }
 0x225   :  { %v3160_v41 = vadd.f32 %v7597_v7, %v3116_v21  ;;  %v1625_v34 = vpop.f32.mrb[8].mxu0  ;;  %v3190_v45 = vmax.f32 %v3158_v20, 0.0 }
 0x226   :  { %v3161_v33 = vadd.f32 %v7599_v9, %v3117_v25  ;;  %v2847_v42 = vpop.f32.mrb[8].mxu1  ;;  %v1627_v49 = vpop.f32.mrb[9].mxu0  ;;  %v3191_v43 = vmax.f32 %v3159_v22, 0.0 }
 0x227   :  { %v3192_v46 = vmax.f32 %v3160_v41, 0.0  ;;  %v3058_v47 = vmax.f32 %v1625_v34, %v2847_v42  ;;  %v2849_v50 = vpop.f32.mrb[9].mxu1  ;;  %v1629_v52 = vpop.f32.mrb[10].mxu0 }
 0x228   :  { %v3193_v44 = vmax.f32 %v3161_v33, 0.0  ;;  %v3059_v51 = vmax.f32 %v1627_v49, %v2849_v50  ;;  %v2851_v53 = vpop.f32.mrb[10].mxu1  ;;  %v1631_v58 = vpop.f32.mrb[11].mxu0  ;;  %v6403_v49 = vld [vmem:[%s7941_s3 + $0x1e8] sm:$0xff]  }
 0x229   :  { %v3222_v56 = vpack.c.bf16 %v3192_v46, %v3190_v45  ;;  %v3060_v57 = vmax.f32 %v1629_v52, %v2851_v53  ;;  %v2853_v54 = vpop.f32.mrb[11].mxu1  ;;  %v6382_v45 = vld [vmem:[%s7941_s3 + $0x100] sm:$0xff]  }
 0x22a   :  { %v3061_v55 = vmax.f32 %v1631_v58, %v2853_v54  ;;  %v3223_v48 = vpack.c.bf16 %v3193_v44, %v3191_v43  ;;  %v6400_v46 = vld [vmem:[%s7941_s3 + $0x1a0] sm:$0xff]   ;;  %v6386_v44 = vld [vmem:[%s7941_s3 + $0x108] sm:$0xff]   ;;  %v6407_v58 = vld [vmem:[%s7941_s3 + $0x1f0] sm:$0xff]  }
 0x22c   :  { %3568 = vmatprep.mubr.bf16.mxu1 %v3223_v48 }
 0x22d   :  { %3569 = vmatmul.mubr.bf16.vlgmr.msra.gmra.mrb[64].mxu1 %v3222_v56  ;;  %v1635_v61 = vpop.f32.mrb[12].mxu0 }
 0x22e   :  { %v2857_v62 = vpop.f32.mrb[12].mxu1  ;;  %5612 = vmatpush3.bf16.msra.mxu1 %v6384_v59  ;;  %v1637_v1 = vpop.f32.mrb[13].mxu0 }
 0x22f   :  { %v3062_v0 = vmax.f32 %v1635_v61, %v2857_v62  ;;  %v2859_v12 = vpop.f32.mrb[13].mxu1  ;;  %5613 = vmatprep.subr.bf16.mxu1 %v6387_v60  ;;  %v1639_v27 = vpop.f32.mrb[14].mxu0 }
 0x230   :  { %v3063_v26 = vmax.f32 %v1637_v1, %v2859_v12  ;;  %v2861_v28 = vpop.f32.mrb[14].mxu1  ;;  %v1641_v31 = vpop.f32.mrb[15].mxu0  ;;  %v6390_v1 = vld [vmem:[%s7941_s3 + $0x110] sm:$0xff]  }
 0x231   :  { %v3118_v29 = vmax.f32 %v3058_v47, %v3062_v0  ;;  %v3064_v30 = vmax.f32 %v1639_v27, %v2861_v28  ;;  %v2863_v32 = vpop.f32.mrb[15].mxu1  ;;  %v6385_v47 = vld [vmem:[%s7941_s3 + $0x148] sm:$0xff]   ;;  %v6408_v12 = vld [vmem:[%s7941_s3 + $0x1b0] sm:$0xff]   ;;  %v6393_v27 = vld [vmem:[%s7941_s3 + $0x158] sm:$0xff]  }
 0x232   :  { %v3119_v35 = vmax.f32 %v3059_v51, %v3063_v26  ;;  %v3065_v36 = vmax.f32 %v1641_v31, %v2863_v32  ;;  %5614 = vmatpush3.bf16.msra.mxu1 %v6388_v3  ;;  %v6404_v51 = vld [vmem:[%s7941_s3 + $0x1a8] sm:$0xff]   ;;  %v6411_v28 = vld [vmem:[%s7941_s3 + $0x1f8] sm:$0xff]  }
 0x233   :  { %v3162_v38 = vadd.f32 %v7597_v7, %v3118_v29  ;;  %v3120_v39 = vmax.f32 %v3060_v57, %v3064_v30  ;;  %5615 = vmatprep.subr.bf16.mxu1 %v6391_v15  ;;  %v6389_v57 = vld [vmem:[%s7941_s3 + $0x150] sm:$0xff]  }
 0x234   :  { %v3163_v6 = vadd.f32 %v7599_v9, %v3119_v35  ;;  %v3121_v63 = vmax.f32 %v3061_v55, %v3065_v36 }
 0x235   :  { %v3164_v2 = vadd.f32 %v7597_v7, %v3120_v39  ;;  %v1645_v5 = vpop.f32.mrb[16].mxu0  ;;  %v3194_v14 = vmax.f32 %v3162_v38, 0.0  ;;  %v6412_v38 = vld [vmem:[%s7941_s3 + $0x1b8] sm:$0xff]  }
 0x236   :  { %v3165_v4 = vadd.f32 %v7599_v9, %v3121_v63  ;;  %v2867_v8 = vpop.f32.mrb[16].mxu1  ;;  %5616 = vmatpush3.bf16.msra.mxu1 %v6392_v37  ;;  %v1647_v16 = vpop.f32.mrb[17].mxu0  ;;  %v3195_v23 = vmax.f32 %v3163_v6, 0.0  ;;  %v6394_v37 = vld [vmem:[%s7941_s3 + $0x118] sm:$0xff]  }
 0x237   :  { %v3196_v10 = vmax.f32 %v3164_v2, 0.0  ;;  %v3066_v11 = vmax.f32 %v1645_v5, %v2867_v8  ;;  %v2869_v17 = vpop.f32.mrb[17].mxu1  ;;  %5617 = vmatprep.subr.bf16.mxu1 %v6395_v40  ;;  %v1649_v20 = vpop.f32.mrb[18].mxu0  ;;  %v6415_v5 = vld [vmem:[%s7941_s3 + $0x2c0] sm:$0xff]  }
 0x238   :  { %v3197_v24 = vmax.f32 %v3165_v4, 0.0  ;;  %v3067_v19 = vmax.f32 %v1647_v16, %v2869_v17  ;;  %v2871_v21 = vpop.f32.mrb[18].mxu1  ;;  %v1651_v41 = vpop.f32.mrb[19].mxu0  ;;  %v6397_v4 = vld [vmem:[%s7941_s3 + $0x160] sm:$0xff]  }
 0x239   :  { %v3224_v22 = vpack.c.bf16 %v3196_v10, %v3194_v14  ;;  %v3068_v25 = vmax.f32 %v1649_v20, %v2871_v21  ;;  %v2873_v33 = vpop.f32.mrb[19].mxu1  ;;  %v6398_v20 = vld [vmem:[%s7941_s3 + $0x120] sm:$0xff]   ;;  %v6401_v21 = vld [vmem:[%s7941_s3 + $0x168] sm:$0xff]  }
 0x23a   :  { %v3069_v34 = vmax.f32 %v1651_v41, %v2873_v33  ;;  %v3225_v42 = vpack.c.bf16 %v3197_v24, %v3195_v23  ;;  %5618 = vmatpush3.bf16.msra.mxu1 %v6396_v13  ;;  %v6402_v41 = vld [vmem:[%s7941_s3 + $0x128] sm:$0xff]  }
 0x23b   :  { %5619 = vmatprep.subr.bf16.mxu1 %v6399_v18 }
 0x23c   :  { %3431 = vmatprep.mubr.bf16.mxu0 %v3225_v42 }
 0x23d   :  { %3432 = vmatmul.mubr.bf16.vlgmr.msra.gmra.mrb[64].mxu0 %v3224_v22  ;;  %v1655_v50 = vpop.f32.mrb[20].mxu0 }
 0x23e   :  { %5590 = vmatpush3.bf16.msra.mxu0 %v6382_v45  ;;  %v2877_v43 = vpop.f32.mrb[20].mxu1  ;;  %5620 = vmatpush3.bf16.msra.mxu1 %v6400_v46  ;;  %v1657_v53 = vpop.f32.mrb[21].mxu0  ;;  %v6405_v45 = vld [vmem:[%s7941_s3 + $0x170] sm:$0xff]  }
 0x23f   :  { %v3070_v52 = vmax.f32 %v1655_v50, %v2877_v43  ;;  %v2879_v56 = vpop.f32.mrb[21].mxu1  ;;  %5591 = vmatprep.subr.bf16.mxu0 %v6385_v47  ;;  %5621 = vmatprep.subr.bf16.mxu1 %v6403_v49  ;;  %v1659_v55 = vpop.f32.mrb[22].mxu0 }
 0x240   :  { %v3071_v54 = vmax.f32 %v1657_v53, %v2879_v56  ;;  %v2881_v48 = vpop.f32.mrb[22].mxu1  ;;  %v1661_v61 = vpop.f32.mrb[23].mxu0  ;;  %v6406_v56 = vld [vmem:[%s7941_s3 + $0x130] sm:$0xff]  }
 0x241   :  { %v3122_v59 = vmax.f32 %v3066_v11, %v3070_v52  ;;  %v3072_v60 = vmax.f32 %v1659_v55, %v2881_v48  ;;  %v2883_v62 = vpop.f32.mrb[23].mxu1 }
 0x242   :  { %v3123_v3 = vmax.f32 %v3067_v19, %v3071_v54  ;;  %v3073_v0 = vmax.f32 %v1661_v61, %v2883_v62  ;;  %5592 = vmatpush3.bf16.msra.mxu0 %v6386_v44  ;;  %5622 = vmatpush3.bf16.msra.mxu1 %v6404_v51  ;;  %v6409_v54 = vld [vmem:[%s7941_s3 + $0x178] sm:$0xff]  }
 0x243   :  { %v3166_v15 = vadd.f32 %v7597_v7, %v3122_v59  ;;  %v3124_v26 = vmax.f32 %v3068_v25, %v3072_v60  ;;  %5593 = vmatprep.subr.bf16.mxu0 %v6389_v57  ;;  %5623 = vmatprep.subr.bf16.mxu1 %v6407_v58 }
 0x244   :  { %v3167_v29 = vadd.f32 %v7599_v9, %v3123_v3  ;;  %v3125_v30 = vmax.f32 %v3069_v34, %v3073_v0  ;;  %v6410_v3 = vld [vmem:[%s7941_s3 + $0x138] sm:$0xff]  }
 0x245   :  { %v3168_v31 = vadd.f32 %v7597_v7, %v3124_v26  ;;  %v1665_v35 = vpop.f32.mrb[24].mxu0  ;;  %v3198_v39 = vmax.f32 %v3166_v15, 0.0 }
 0x246   :  { %v3169_v32 = vadd.f32 %v7599_v9, %v3125_v30  ;;  %5594 = vmatpush3.bf16.msra.mxu0 %v6390_v1  ;;  %v2887_v36 = vpop.f32.mrb[24].mxu1  ;;  %5624 = vmatpush3.bf16.msra.mxu1 %v6408_v12  ;;  %v1667_v63 = vpop.f32.mrb[25].mxu0  ;;  %v3199_v8 = vmax.f32 %v3167_v29, 0.0 }
 0x247   :  { %v3200_v40 = vmax.f32 %v3168_v31, 0.0  ;;  %v3074_v6 = vmax.f32 %v1665_v35, %v2887_v36  ;;  %v2889_v2 = vpop.f32.mrb[25].mxu1  ;;  %5595 = vmatprep.subr.bf16.mxu0 %v6393_v27  ;;  %5625 = vmatprep.subr.bf16.mxu1 %v6411_v28  ;;  %v1669_v10 = vpop.f32.mrb[26].mxu0  ;;  %v6413_v27 = vld [vmem:[%s7941_s3 + $0x240] sm:$0xff]  }
 0x248   :  { %v3201_v13 = vmax.f32 %v3169_v32, 0.0  ;;  %v3075_v14 = vmax.f32 %v1667_v63, %v2889_v2  ;;  %v2891_v11 = vpop.f32.mrb[26].mxu1  ;;  %v1671_v18 = vpop.f32.mrb[27].mxu0  ;;  %v6416_v63 = vld [vmem:[%s7941_s3 + $0x280] sm:$0xff]   ;;  %v6417_v2 = vld [vmem:[%s7941_s3 + $0x248] sm:$0xff]  }
 0x249   :  { %v7685_v16 = vpack.c.bf16 %v3200_v40, %v3198_v39  ;;  %v3076_v17 = vmax.f32 %v1669_v10, %v2891_v11  ;;  %v2893_v23 = vpop.f32.mrb[27].mxu1 }
 0x24a   :  { %v3077_v24 = vmax.f32 %v1671_v18, %v2893_v23  ;;  %5596 = vmatpush3.bf16.msra.mxu0 %v6394_v37  ;;  %v3227_v19 = vpack.c.bf16 %v3201_v13, %v3199_v8  ;;  %5626 = vmatpush3.bf16.msra.mxu1 %v6412_v38  ;;  %v6418_v13 = vld [vmem:[%s7941_s3 + $0x208] sm:$0xff]   ;;  %v6423_v18 = vld [vmem:[%s7941_s3 + $0x2d0] sm:$0xff]  }
 0x24b   :  { %5597 = vmatprep.subr.bf16.mxu0 %v6397_v4  ;;  %5655 = vmatprep.subr.bf16.mxu1 %v6415_v5  ;;  %v6419_v4 = vld [vmem:[%s7941_s3 + $0x2c8] sm:$0xff]  }
 0x24c   :  { %3738 = vmatprep.mubr.bf16.mxu0 %v3227_v19 }
 0x24d   :  { %v1675_v22 = vpop.f32.mrb[28].mxu0 }
 0x24e   :  { %5598 = vmatpush3.bf16.msra.mxu0 %v6398_v20  ;;  %v2897_v25 = vpop.f32.mrb[28].mxu1  ;;  %v1677_v34 = vpop.f32.mrb[29].mxu0 }
 0x24f   :  { %v3078_v33 = vmax.f32 %v1675_v22, %v2897_v25  ;;  %v2899_v42 = vpop.f32.mrb[29].mxu1  ;;  %5599 = vmatprep.subr.bf16.mxu0 %v6401_v21  ;;  %v1679_v47 = vpop.f32.mrb[30].mxu0 }
 0x250   :  { %v3079_v46 = vmax.f32 %v1677_v34, %v2899_v42  ;;  %v2901_v49 = vpop.f32.mrb[30].mxu1  ;;  %v1681_v44 = vpop.f32.mrb[31].mxu0  ;;  %v6422_v34 = vld [vmem:[%s7941_s3 + $0x210] sm:$0xff]  }
 0x251   :  { %v3126_v50 = vmax.f32 %v3074_v6, %v3078_v33  ;;  %v3080_v43 = vmax.f32 %v1679_v47, %v2901_v49  ;;  %v2903_v51 = vpop.f32.mrb[31].mxu1  ;;  %v6414_v6 = vld [vmem:[%s7941_s3 + $0x200] sm:$0xff]   ;;  %v6424_v42 = vld [vmem:[%s7941_s3 + $0x290] sm:$0xff]   ;;  %v6425_v47 = vld [vmem:[%s7941_s3 + $0x258] sm:$0xff]  }
 0x252   :  { %v3127_v52 = vmax.f32 %v3075_v14, %v3079_v46  ;;  %v3081_v53 = vmax.f32 %v1681_v44, %v2903_v51  ;;  %5600 = vmatpush3.bf16.msra.mxu0 %v6402_v41  ;;  %v6420_v14 = vld [vmem:[%s7941_s3 + $0x288] sm:$0xff]   ;;  %v6427_v49 = vld [vmem:[%s7941_s3 + $0x2d8] sm:$0xff]  }
 0x253   :  { %v3170_v57 = vadd.f32 %v7597_v7, %v3126_v50  ;;  %v3128_v58 = vmax.f32 %v3076_v17, %v3080_v43  ;;  %5601 = vmatprep.subr.bf16.mxu0 %v6405_v45 }
 0x254   :  { %v3171_v55 = vadd.f32 %v7599_v9, %v3127_v52  ;;  %v3129_v48 = vmax.f32 %v3077_v24, %v3081_v53 }
 0x255   :  { %v3172_v59 = vadd.f32 %v7597_v7, %v3128_v58  ;;  %v1685_v61 = vpop.f32.mrb[32].mxu0  ;;  %v3202_v0 = vmax.f32 %v3170_v57, 0.0  ;;  %v6428_v57 = vld [vmem:[%s7941_s3 + $0x298] sm:$0xff]  }
 0x256   :  { %v3173_v60 = vadd.f32 %v7599_v9, %v3129_v48  ;;  %5602 = vmatpush3.bf16.msra.mxu0 %v6406_v56  ;;  %v2907_v62 = vpop.f32.mrb[32].mxu1  ;;  %v1687_v15 = vpop.f32.mrb[33].mxu0  ;;  %v3203_v28 = vmax.f32 %v3171_v55, 0.0  ;;  %v6426_v56 = vld [vmem:[%s7941_s3 + $0x218] sm:$0xff]  }
 0x257   :  { %v3204_v1 = vmax.f32 %v3172_v59, 0.0  ;;  %v3082_v12 = vmax.f32 %v1685_v61, %v2907_v62  ;;  %v2909_v26 = vpop.f32.mrb[33].mxu1  ;;  %5603 = vmatprep.subr.bf16.mxu0 %v6409_v54  ;;  %v1689_v31 = vpop.f32.mrb[34].mxu0  ;;  %v6431_v61 = vld [vmem:[%s7941_s3 + $0x2e0] sm:$0xff]  }
 0x258   :  { %v3205_v29 = vmax.f32 %v3173_v60, 0.0  ;;  %v3083_v30 = vmax.f32 %v1687_v15, %v2909_v26  ;;  %v2911_v32 = vpop.f32.mrb[34].mxu1  ;;  %v1691_v37 = vpop.f32.mrb[35].mxu0  ;;  %v6429_v60 = vld [vmem:[%s7941_s3 + $0x260] sm:$0xff]  }
 0x259   :  { %v3228_v35 = vpack.c.bf16 %v3204_v1, %v3202_v0  ;;  %v3084_v36 = vmax.f32 %v1689_v31, %v2911_v32  ;;  %v2913_v38 = vpop.f32.mrb[35].mxu1  ;;  %v6430_v31 = vld [vmem:[%s7941_s3 + $0x220] sm:$0xff]  }
 0x25a   :  { %v3085_v39 = vmax.f32 %v1691_v37, %v2913_v38  ;;  %5604 = vmatpush3.bf16.msra.mxu0 %v6410_v3  ;;  %v3229_v40 = vpack.c.bf16 %v3205_v29, %v3203_v28  ;;  %v6432_v32 = vld [vmem:[%s7941_s3 + $0x2a0] sm:$0xff]  }
 0x25b   :  { %5633 = vmatprep.subr.bf16.mxu0 %v6413_v27 }
 0x25c   :  { %3910 = vmatprep.mubr.bf16.mxu1 %v3229_v40  ;;  %v6436_v40 = vld [vmem:[%s7941_s3 + $0x2a8] sm:$0xff]  }
 0x25d   :  { %3739 = vmatmul.mubr.bf16.vlgmr.msra.gmra.mrb[68].mxu0 %v7685_v16  ;;  %3911 = vmatmul.mubr.bf16.vlgmr.msra.gmra.mrb[68].mxu1 %v3228_v35  ;;  %v1695_v5 = vpop.f32.mrb[36].mxu0  ;;  %v6421_v16 = vld [vmem:[%s7941_s3 + $0x250] sm:$0xff]   ;;  %v6433_v35 = vld [vmem:[%s7941_s3 + $0x268] sm:$0xff]  }
 0x25e   :  { %5634 = vmatpush3.bf16.msra.mxu0 %v6414_v6  ;;  %v2917_v8 = vpop.f32.mrb[36].mxu1  ;;  %5656 = vmatpush3.bf16.msra.mxu1 %v6416_v63  ;;  %v1697_v11 = vpop.f32.mrb[37].mxu0 }
 0x25f   :  { %v3086_v10 = vmax.f32 %v1695_v5, %v2917_v8  ;;  %v2919_v17 = vpop.f32.mrb[37].mxu1  ;;  %5635 = vmatprep.subr.bf16.mxu0 %v6417_v2  ;;  %5657 = vmatprep.subr.bf16.mxu1 %v6419_v4  ;;  %v1699_v24 = vpop.f32.mrb[38].mxu0  ;;  %v6437_v4 = vld [vmem:[%s7941_s3 + $0x270] sm:$0xff]  }
 0x260   :  { %v3087_v23 = vmax.f32 %v1697_v11, %v2919_v17  ;;  %v2921_v19 = vpop.f32.mrb[38].mxu1  ;;  %v1701_v22 = vpop.f32.mrb[39].mxu0  ;;  %v6439_v5 = vld [vmem:[%s7941_s3 + $0x2f0] sm:$0xff]  }
 0x261   :  { %v3130_v20 = vmax.f32 %v3082_v12, %v3086_v10  ;;  %v3088_v21 = vmax.f32 %v1699_v24, %v2921_v19  ;;  %v2923_v25 = vpop.f32.mrb[39].mxu1  ;;  %v6438_v24 = vld [vmem:[%s7941_s3 + $0x230] sm:$0xff]  }
 0x262   :  { %v3131_v41 = vmax.f32 %v3083_v30, %v3087_v23  ;;  %v3089_v33 = vmax.f32 %v1701_v22, %v2923_v25  ;;  %5636 = vmatpush3.bf16.msra.mxu0 %v6418_v13  ;;  %5658 = vmatpush3.bf16.msra.mxu1 %v6420_v14  ;;  %v6440_v19 = vld [vmem:[%s7941_s3 + $0x2b0] sm:$0xff]   ;;  %v6441_v22 = vld [vmem:[%s7941_s3 + $0x278] sm:$0xff]  }
 0x263   :  { %v3174_v45 = vadd.f32 %v7597_v7, %v3130_v20  ;;  %v3132_v46 = vmax.f32 %v3084_v36, %v3088_v21  ;;  %5637 = vmatprep.subr.bf16.mxu0 %v6421_v16  ;;  %5659 = vmatprep.subr.bf16.mxu1 %v6423_v18  ;;  %v6435_v36 = vld [vmem:[%s7941_s3 + $0x2e8] sm:$0xff]   ;;  %v6443_v25 = vld [vmem:[%s7941_s3 + $0x2f8] sm:$0xff]  }
 0x264   :  { %v3175_v50 = vadd.f32 %v7599_v9, %v3131_v41  ;;  %v3133_v43 = vmax.f32 %v3085_v39, %v3089_v33  ;;  %v6434_v39 = vld [vmem:[%s7941_s3 + $0x228] sm:$0xff]  }
 0x265   :  { %v3176_v44 = vadd.f32 %v7597_v7, %v3132_v46  ;;  %v1705_v52 = vpop.f32.mrb[40].mxu0  ;;  %v3206_v58 = vmax.f32 %v3174_v45, 0.0 }
 0x266   :  { %v3177_v51 = vadd.f32 %v7599_v9, %v3133_v43  ;;  %5638 = vmatpush3.bf16.msra.mxu0 %v6422_v34  ;;  %v2927_v53 = vpop.f32.mrb[40].mxu1  ;;  %5660 = vmatpush3.bf16.msra.mxu1 %v6424_v42  ;;  %v1707_v48 = vpop.f32.mrb[41].mxu0  ;;  %v3207_v62 = vmax.f32 %v3175_v50, 0.0 }
 0x267   :  { %v3208_v54 = vmax.f32 %v3176_v44, 0.0  ;;  %v3090_v55 = vmax.f32 %v1705_v52, %v2927_v53  ;;  %v2929_v59 = vpop.f32.mrb[41].mxu1  ;;  %5639 = vmatprep.subr.bf16.mxu0 %v6425_v47  ;;  %5661 = vmatprep.subr.bf16.mxu1 %v6427_v49  ;;  %v1709_v1 = vpop.f32.mrb[42].mxu0  ;;  %v6442_v47 = vld [vmem:[%s7941_s3 + $0x238] sm:$0xff]   ;;  %v6445_v53 = vld [vmem:[%s7941_s3 + $0x340] sm:$0xff]  }
 0x268   :  { %v3209_v3 = vmax.f32 %v3177_v51, 0.0  ;;  %v3091_v0 = vmax.f32 %v1707_v48, %v2929_v59  ;;  %v2931_v12 = vpop.f32.mrb[42].mxu1  ;;  %v1711_v27 = vpop.f32.mrb[43].mxu0  ;;  %v6444_v49 = vld [vmem:[%s7941_s3 + $0x2b8] sm:$0xff]  }
 0x269   :  { %v7768_v15 = vpack.c.bf16 %v3208_v54, %v3206_v58  ;;  %v3092_v26 = vmax.f32 %v1709_v1, %v2931_v12  ;;  %v2933_v28 = vpop.f32.mrb[43].mxu1  ;;  %v6446_v1 = vld [vmem:[%s7941_s3 + $0x300] sm:$0xff]  }
 0x26a   :  { %v3093_v29 = vmax.f32 %v1711_v27, %v2933_v28  ;;  %5640 = vmatpush3.bf16.msra.mxu0 %v6426_v56  ;;  %5662 = vmatpush3.bf16.msra.mxu1 %v6428_v57  ;;  %v3231_v30 = vpack.c.bf16 %v3209_v3, %v3207_v62  ;;  %v6447_v56 = vld [vmem:[%s7941_s3 + $0x3c0] sm:$0xff]   ;;  %v6451_v27 = vld [vmem:[%s7941_s3 + $0x3c8] sm:$0xff]  }
 0x26b   :  { %5641 = vmatprep.subr.bf16.mxu0 %v6429_v60  ;;  %5663 = vmatprep.subr.bf16.mxu1 %v6431_v61  ;;  %v6448_v12 = vld [vmem:[%s7941_s3 + $0x380] sm:$0xff]  }
 0x26c   :  { %4082 = vmatprep.mubr.bf16.mxu0 %v3231_v30  ;;  %v6450_v30 = vld [vmem:[%s7941_s3 + $0x308] sm:$0xff]  }
 0x26d   :  { %v1715_v37 = vpop.f32.mrb[44].mxu0 }
 0x26e   :  { %5642 = vmatpush3.bf16.msra.mxu0 %v6430_v31  ;;  %v2937_v38 = vpop.f32.mrb[44].mxu1  ;;  %5664 = vmatpush3.bf16.msra.mxu1 %v6432_v32  ;;  %v1717_v63 = vpop.f32.mrb[45].mxu0  ;;  %v6452_v31 = vld [vmem:[%s7941_s3 + $0x388] sm:$0xff]  }
 0x26f   :  { %v3094_v6 = vmax.f32 %v1715_v37, %v2937_v38  ;;  %v2939_v2 = vpop.f32.mrb[45].mxu1  ;;  %5643 = vmatprep.subr.bf16.mxu0 %v6433_v35  ;;  %5665 = vmatprep.subr.bf16.mxu1 %v6435_v36  ;;  %v1719_v13 = vpop.f32.mrb[46].mxu0  ;;  %v6455_v37 = vld [vmem:[%s7941_s3 + $0x3d0] sm:$0xff]  }
 0x270   :  { %v3095_v8 = vmax.f32 %v1717_v63, %v2939_v2  ;;  %v2941_v14 = vpop.f32.mrb[46].mxu1  ;;  %v1721_v17 = vpop.f32.mrb[47].mxu0 }
 0x271   :  { %v3134_v10 = vmax.f32 %v3090_v55, %v3094_v6  ;;  %v3096_v11 = vmax.f32 %v1719_v13, %v2941_v14  ;;  %v2943_v16 = vpop.f32.mrb[47].mxu1  ;;  %v6454_v13 = vld [vmem:[%s7941_s3 + $0x310] sm:$0xff]  }
 0x272   :  { %v3135_v18 = vmax.f32 %v3091_v0, %v3095_v8  ;;  %v3097_v23 = vmax.f32 %v1721_v17, %v2943_v16  ;;  %5644 = vmatpush3.bf16.msra.mxu0 %v6434_v39  ;;  %5666 = vmatpush3.bf16.msra.mxu1 %v6436_v40  ;;  %v6456_v14 = vld [vmem:[%s7941_s3 + $0x390] sm:$0xff]   ;;  %v6457_v17 = vld [vmem:[%s7941_s3 + $0x358] sm:$0xff]  }
 0x273   :  { %v3178_v20 = vadd.f32 %v7597_v7, %v3134_v10  ;;  %v3136_v21 = vmax.f32 %v3092_v26, %v3096_v11  ;;  %5645 = vmatprep.subr.bf16.mxu0 %v6437_v4  ;;  %5667 = vmatprep.subr.bf16.mxu1 %v6439_v5  ;;  %v6449_v26 = vld [vmem:[%s7941_s3 + $0x348] sm:$0xff]   ;;  %v6459_v16 = vld [vmem:[%s7941_s3 + $0x3d8] sm:$0xff]  }
 0x274   :  { %v3179_v41 = vadd.f32 %v7599_v9, %v3135_v18  ;;  %v3137_v33 = vmax.f32 %v3093_v29, %v3097_v23 }
 0x275   :  { %v3180_v34 = vadd.f32 %v7597_v7, %v3136_v21  ;;  %v1725_v45 = vpop.f32.mrb[48].mxu0  ;;  %v3210_v50 = vmax.f32 %v3178_v20, 0.0 }
 0x276   :  { %v3181_v42 = vadd.f32 %v7599_v9, %v3137_v33  ;;  %5646 = vmatpush3.bf16.msra.mxu0 %v6438_v24  ;;  %v2947_v46 = vpop.f32.mrb[48].mxu1  ;;  %5668 = vmatpush3.bf16.msra.mxu1 %v6440_v19  ;;  %v1727_v51 = vpop.f32.mrb[49].mxu0  ;;  %v3211_v57 = vmax.f32 %v3179_v41, 0.0 }
 0x277   :  { %v3212_v43 = vmax.f32 %v3180_v34, 0.0  ;;  %v3098_v44 = vmax.f32 %v1725_v45, %v2947_v46  ;;  %v2949_v52 = vpop.f32.mrb[49].mxu1  ;;  %5647 = vmatprep.subr.bf16.mxu0 %v6441_v22  ;;  %5669 = vmatprep.subr.bf16.mxu1 %v6443_v25  ;;  %v1729_v55 = vpop.f32.mrb[50].mxu0  ;;  %v6458_v22 = vld [vmem:[%s7941_s3 + $0x318] sm:$0xff]   ;;  %v6461_v46 = vld [vmem:[%s7941_s3 + $0x360] sm:$0xff]  }
 0x278   :  { %v3213_v58 = vmax.f32 %v3181_v42, 0.0  ;;  %v3099_v54 = vmax.f32 %v1727_v51, %v2949_v52  ;;  %v2951_v48 = vpop.f32.mrb[50].mxu1  ;;  %v1731_v61 = vpop.f32.mrb[51].mxu0  ;;  %v6460_v25 = vld [vmem:[%s7941_s3 + $0x398] sm:$0xff]  }
 0x279   :  { %v3232_v59 = vpack.c.bf16 %v3212_v43, %v3210_v50  ;;  %v3100_v60 = vmax.f32 %v1729_v55, %v2951_v48  ;;  %v2953_v62 = vpop.f32.mrb[51].mxu1  ;;  %v6462_v55 = vld [vmem:[%s7941_s3 + $0x320] sm:$0xff]  }
 0x27a   :  { %v3101_v3 = vmax.f32 %v1731_v61, %v2953_v62  ;;  %5648 = vmatpush3.bf16.msra.mxu0 %v6442_v47  ;;  %5670 = vmatpush3.bf16.msra.mxu1 %v6444_v49  ;;  %v3233_v0 = vpack.c.bf16 %v3213_v58, %v3211_v57  ;;  %v6463_v47 = vld [vmem:[%s7941_s3 + $0x3e0] sm:$0xff]  }
 0x27b   :  { %5677 = vmatprep.subr.bf16.mxu0 %v6445_v53  ;;  %5699 = vmatprep.subr.bf16.mxu1 %v6447_v56  ;;  %v6464_v48 = vld [vmem:[%s7941_s3 + $0x3a0] sm:$0xff]  }
 0x27c   :  { %4254 = vmatprep.mubr.bf16.mxu1 %v3233_v0  ;;  %v6468_v0 = vld [vmem:[%s7941_s3 + $0x3a8] sm:$0xff]  }
 0x27d   :  { %4083 = vmatmul.mubr.bf16.vlgmr.msra.gmra.mrb[72].mxu0 %v7768_v15  ;;  %4255 = vmatmul.mubr.bf16.vlgmr.msra.gmra.mrb[72].mxu1 %v3232_v59  ;;  %v1735_v28 = vpop.f32.mrb[52].mxu0  ;;  %v6453_v15 = vld [vmem:[%s7941_s3 + $0x350] sm:$0xff]   ;;  %v6465_v59 = vld [vmem:[%s7941_s3 + $0x368] sm:$0xff]  }
 0x27e   :  { %5678 = vmatpush3.bf16.msra.mxu0 %v6446_v1  ;;  %v2957_v29 = vpop.f32.mrb[52].mxu1  ;;  %5700 = vmatpush3.bf16.msra.mxu1 %v6448_v12  ;;  %v1737_v35 = vpop.f32.mrb[53].mxu0 }
 0x27f   :  { %v3102_v32 = vmax.f32 %v1735_v28, %v2957_v29  ;;  %v2959_v36 = vpop.f32.mrb[53].mxu1  ;;  %5679 = vmatprep.subr.bf16.mxu0 %v6449_v26  ;;  %5701 = vmatprep.subr.bf16.mxu1 %v6451_v27  ;;  %v1739_v39 = vpop.f32.mrb[54].mxu0  ;;  %v6469_v27 = vld [vmem:[%s7941_s3 + $0x370] sm:$0xff]  }
 0x280   :  { %v3103_v38 = vmax.f32 %v1737_v35, %v2959_v36  ;;  %v2961_v40 = vpop.f32.mrb[54].mxu1  ;;  %v1741_v2 = vpop.f32.mrb[55].mxu0  ;;  %v6471_v28 = vld [vmem:[%s7941_s3 + $0x3f0] sm:$0xff]  }
 0x281   :  { %v3138_v6 = vmax.f32 %v3098_v44, %v3102_v32  ;;  %v3104_v63 = vmax.f32 %v1739_v39, %v2961_v40  ;;  %v2963_v4 = vpop.f32.mrb[55].mxu1  ;;  %v6470_v39 = vld [vmem:[%s7941_s3 + $0x330] sm:$0xff]  }
 0x282   :  { %v3139_v5 = vmax.f32 %v3099_v54, %v3103_v38  ;;  %v3105_v8 = vmax.f32 %v1741_v2, %v2963_v4  ;;  %5680 = vmatpush3.bf16.msra.mxu0 %v6450_v30  ;;  %5702 = vmatpush3.bf16.msra.mxu1 %v6452_v31  ;;  %v6472_v40 = vld [vmem:[%s7941_s3 + $0x3b0] sm:$0xff]   ;;  %v6473_v2 = vld [vmem:[%s7941_s3 + $0x378] sm:$0xff]  }
 0x283   :  { %v3182_v10 = vadd.f32 %v7597_v7, %v3138_v6  ;;  %v3140_v11 = vmax.f32 %v3100_v60, %v3104_v63  ;;  %5681 = vmatprep.subr.bf16.mxu0 %v6453_v15  ;;  %5703 = vmatprep.subr.bf16.mxu1 %v6455_v37  ;;  %v6467_v60 = vld [vmem:[%s7941_s3 + $0x3e8] sm:$0xff]   ;;  %v6475_v4 = vld [vmem:[%s7941_s3 + $0x3f8] sm:$0xff]  }
 0x284   :  { %v3183_v18 = vadd.f32 %v7599_v9, %v3139_v5  ;;  %v3141_v23 = vmax.f32 %v3101_v3, %v3105_v8  ;;  %v6466_v3 = vld [vmem:[%s7941_s3 + $0x328] sm:$0xff]  }
 0x285   :  { %v3184_v24 = vadd.f32 %v7597_v7, %v3140_v11  ;;  %v1745_v20 = vpop.f32.mrb[56].mxu0  ;;  %v3214_v41 = vmax.f32 %v3182_v10, 0.0  ;;  %v6474_v10 = vld [vmem:[%s7941_s3 + $0x338] sm:$0xff]  }
 0x286   :  { %v3185_v19 = vadd.f32 %v7599_v9, %v3141_v23  ;;  %5682 = vmatpush3.bf16.msra.mxu0 %v6454_v13  ;;  %v2967_v21 = vpop.f32.mrb[56].mxu1  ;;  %5704 = vmatpush3.bf16.msra.mxu1 %v6456_v14  ;;  %v1747_v42 = vpop.f32.mrb[57].mxu0  ;;  %v3215_v49 = vmax.f32 %v3183_v18, 0.0  ;;  %v6476_v11 = vld [vmem:[%s7941_s3 + $0x3b8] sm:$0xff]  }
 0x287   :  { %v3216_v33 = vmax.f32 %v3184_v24, 0.0  ;;  %v3106_v34 = vmax.f32 %v1745_v20, %v2967_v21  ;;  %v2969_v45 = vpop.f32.mrb[57].mxu1  ;;  %5683 = vmatprep.subr.bf16.mxu0 %v6457_v17  ;;  %5705 = vmatprep.subr.bf16.mxu1 %v6459_v16  ;;  %v1749_v44 = vpop.f32.mrb[58].mxu0 }
 0x288   :  { %v3217_v50 = vmax.f32 %v3185_v19, 0.0  ;;  %v3107_v43 = vmax.f32 %v1747_v42, %v2969_v45  ;;  %v2971_v51 = vpop.f32.mrb[58].mxu1  ;;  %v1751_v56 = vpop.f32.mrb[59].mxu0 }
 0x289   :  { %v7875_v52 = vpack.c.bf16 %v3216_v33, %v3214_v41  ;;  %v3108_v53 = vmax.f32 %v1749_v44, %v2971_v51  ;;  %v2973_v57 = vpop.f32.mrb[59].mxu1 }
 0x28a   :  { %v3109_v58 = vmax.f32 %v1751_v56, %v2973_v57  ;;  %5684 = vmatpush3.bf16.msra.mxu0 %v6458_v22  ;;  %5706 = vmatpush3.bf16.msra.mxu1 %v6460_v25  ;;  %v3235_v54 = vpack.c.bf16 %v3217_v50, %v3215_v49  ;;  %v12_v25 = vstv %s7943_s6 }
 0x28b   :  { %5685 = vmatprep.subr.bf16.mxu0 %v6461_v46  ;;  %5707 = vmatprep.subr.bf16.mxu1 %v6463_v47  ;;  %13 = vst [vmem:[#allocation2] sm:$0x1] %v12_v25 }
 0x28c   :  { %4426 = vmatprep.mubr.bf16.mxu0 %v3235_v54 }
 0x28d   :  { %v1755_v61 = vpop.f32.mrb[60].mxu0 }
 0x28e   :  { %5686 = vmatpush3.bf16.msra.mxu0 %v6462_v55  ;;  %v2977_v62 = vpop.f32.mrb[60].mxu1  ;;  %5708 = vmatpush3.bf16.msra.mxu1 %v6464_v48  ;;  %v1757_v12 = vpop.f32.mrb[61].mxu0 }
 0x28f   :  { %v3110_v1 = vmax.f32 %v1755_v61, %v2977_v62  ;;  %v2979_v26 = vpop.f32.mrb[61].mxu1  ;;  %5687 = vmatprep.subr.bf16.mxu0 %v6465_v59  ;;  %5709 = vmatprep.subr.bf16.mxu1 %v6467_v60  ;;  %v1759_v30 = vpop.f32.mrb[62].mxu0 }
 0x290   :  { %v3111_v29 = vmax.f32 %v1757_v12, %v2979_v26  ;;  %v2981_v31 = vpop.f32.mrb[62].mxu1  ;;  %v1761_v36 = vpop.f32.mrb[63].mxu0 }
 0x291   :  { %v3142_v32 = vmax.f32 %v3106_v34, %v3110_v1  ;;  %v3112_v35 = vmax.f32 %v1759_v30, %v2981_v31  ;;  %v2983_v15 = vpop.f32.mrb[63].mxu1 }
 0x292   :  { %v3143_v37 = vmax.f32 %v3107_v43, %v3111_v29  ;;  %v3113_v38 = vmax.f32 %v1761_v36, %v2983_v15  ;;  %5688 = vmatpush3.bf16.msra.mxu0 %v6466_v3  ;;  %5710 = vmatpush3.bf16.msra.mxu1 %v6468_v0 }
 0x293   :  { %v3186_v6 = vadd.f32 %v7597_v7, %v3142_v32  ;;  %v3144_v63 = vmax.f32 %v3108_v53, %v3112_v35  ;;  %5689 = vmatprep.subr.bf16.mxu0 %v6469_v27  ;;  %5711 = vmatprep.subr.bf16.mxu1 %v6471_v28 }
 0x294   :  { %v3187_v5 = vadd.f32 %v7599_v9, %v3143_v37  ;;  %v3145_v8 = vmax.f32 %v3109_v58, %v3113_v38 }
 0x295   :  { %v3188_v13 = vadd.f32 %v7597_v7, %v3144_v63  ;;  %v3218_v17 = vmax.f32 %v3186_v6, 0.0 }
 0x296   :  { %v3189_v14 = vadd.f32 %v7599_v9, %v3145_v8  ;;  %5690 = vmatpush3.bf16.msra.mxu0 %v6470_v39  ;;  %5712 = vmatpush3.bf16.msra.mxu1 %v6472_v40  ;;  %v3219_v18 = vmax.f32 %v3187_v5, 0.0 }
 0x297   :  { %v3220_v16 = vmax.f32 %v3188_v13, 0.0  ;;  %5691 = vmatprep.subr.bf16.mxu0 %v6473_v2  ;;  %5713 = vmatprep.subr.bf16.mxu1 %v6475_v4 }
 0x298   :  { %v3221_v23 = vmax.f32 %v3189_v14, 0.0 }
 0x299   :  { %v3236_v24 = vpack.c.bf16 %v3220_v16, %v3218_v17 }
 0x29a   :  { %5692 = vmatpush3.bf16.msra.mxu0 %v6474_v10  ;;  %5714 = vmatpush3.bf16.msra.mxu1 %v6476_v11  ;;  %v3237_v7 = vpack.c.bf16 %v3221_v23, %v3219_v18  ;;  %v5542_v18 = vld [vmem:[%s7944_s4] ss:$0 sm:$0xff] }
 0x29c   :  { %4598 = vmatprep.mubr.bf16.mxu1 %v3237_v7 }
 0x29d   :  { %4427 = vmatmul.mubr.bf16.vlgmr.msra.gmra.mrb[76].mxu0 %v7875_v52  ;;  %4599 = vmatmul.mubr.bf16.vlgmr.msra.gmra.mrb[76].mxu1 %v3236_v24 }
 0x300   :  { %v5583_v9 = vpop.f32.mrb[64].mxu1 }
 0x301   :  { %v5584_v19 = vpop.f32.mrb[65].mxu1 }
 0x302   :  { %v5585_v20 = vadd.f32 %v5584_v19, %v5583_v9  ;;  %v5586_v21 = vpop.f32.mrb[66].mxu1  ;;  %v5543_v19 = vld [vmem:[%s7945_s5] ss:$0 sm:$0xff] }
 0x303   :  { %v5587_v22 = vpop.f32.mrb[67].mxu1 }
 0x304   :  { %v5588_v41 = vadd.f32 %v5587_v22, %v5586_v21 }
 0x310   :  { %v5561_v33 = vpop.f32.mrb[64].mxu0 }
 0x311   :  { %v5562_v34 = vpop.f32.mrb[65].mxu0 }
 0x312   :  { %v5563_v42 = vadd.f32 %v5562_v34, %v5561_v33  ;;  %v5564_v45 = vpop.f32.mrb[66].mxu0  ;;  %v6497_v33 = vmov 0   ;;  %v5544_v34 = vld [vmem:[#allocation2] ss:$0 sm:$0xff] }
 0x313   :  { %v5565_v46 = vpop.f32.mrb[67].mxu0  ;;  %5978 = vset.pattern.permute.xlu1 %v6497_v33  ;;  %5979 = vset.pattern.permute.xlu0 %v6497_v33 }
 0x314   :  { %v3571_v47 = vadd.f32 %v5585_v20, %v5563_v42  ;;  %v5566_v49 = vadd.f32 %v5565_v46, %v5564_v45 }
 0x316   :  { %v3574_v50 = vadd.f32 %v5588_v41, %v5566_v49 }
 0x330   :  { %v5605_v43 = vpop.f32.mrb[68].mxu0  ;;  %v5627_v44 = vpop.f32.mrb[68].mxu1 }
 0x331   :  { %v5606_v51 = vpop.f32.mrb[69].mxu0  ;;  %v5628_v52 = vpop.f32.mrb[69].mxu1 }
 0x332   :  { %v5607_v53 = vadd.f32 %v5606_v51, %v5605_v43  ;;  %v5608_v56 = vpop.f32.mrb[70].mxu0  ;;  %v5629_v57 = vadd.f32 %v5628_v52, %v5627_v44  ;;  %v5630_v58 = vpop.f32.mrb[70].mxu1 }
 0x333   :  { %v5609_v54 = vpop.f32.mrb[71].mxu0  ;;  %v5631_v55 = vpop.f32.mrb[71].mxu1 }
 0x334   :  { %v3747_v48 = vadd.f32 %v5607_v53, %v3571_v47  ;;  %v5610_v59 = vadd.f32 %v5609_v54, %v5608_v56  ;;  %v5632_v60 = vadd.f32 %v5631_v55, %v5630_v58 }
 0x336   :  { %v3919_v61 = vadd.f32 %v5629_v57, %v3747_v48  ;;  %v3748_v62 = vadd.f32 %v5610_v59, %v3574_v50 }
 0x338   :  { %v3920_v3 = vadd.f32 %v5632_v60, %v3748_v62 }
 0x350   :  { %v5649_v0 = vpop.f32.mrb[72].mxu0  ;;  %v5671_v1 = vpop.f32.mrb[72].mxu1 }
 0x351   :  { %v5650_v12 = vpop.f32.mrb[73].mxu0  ;;  %v5672_v26 = vpop.f32.mrb[73].mxu1 }
 0x352   :  { %v5651_v27 = vadd.f32 %v5650_v12, %v5649_v0  ;;  %v5652_v28 = vpop.f32.mrb[74].mxu0  ;;  %v5673_v29 = vadd.f32 %v5672_v26, %v5671_v1  ;;  %v5674_v30 = vpop.f32.mrb[74].mxu1 }
 0x353   :  { %v5653_v31 = vpop.f32.mrb[75].mxu0  ;;  %v5675_v32 = vpop.f32.mrb[75].mxu1 }
 0x354   :  { %v4091_v35 = vadd.f32 %v5651_v27, %v3919_v61  ;;  %v5654_v36 = vadd.f32 %v5653_v31, %v5652_v28  ;;  %v5676_v15 = vadd.f32 %v5675_v32, %v5674_v30 }
 0x356   :  { %v4263_v37 = vadd.f32 %v5673_v29, %v4091_v35  ;;  %v4092_v38 = vadd.f32 %v5654_v36, %v3920_v3 }
 0x358   :  { %v4264_v39 = vadd.f32 %v5676_v15, %v4092_v38 }
 0x370   :  { %v5693_v40 = vpop.f32.mrb[76].mxu0  ;;  %v5715_v6 = vpop.f32.mrb[76].mxu1 }
 0x371   :  { %v5694_v63 = vpop.f32.mrb[77].mxu0  ;;  %v5716_v2 = vpop.f32.mrb[77].mxu1 }
 0x372   :  { %v5695_v4 = vadd.f32 %v5694_v63, %v5693_v40  ;;  %v5696_v5 = vpop.f32.mrb[78].mxu0  ;;  %v5717_v8 = vadd.f32 %v5716_v2, %v5715_v6  ;;  %v5718_v13 = vpop.f32.mrb[78].mxu1 }
 0x373   :  { %v5697_v14 = vpop.f32.mrb[79].mxu0  ;;  %v5719_v10 = vpop.f32.mrb[79].mxu1 }
 0x374   :  { %v4435_v11 = vadd.f32 %v5695_v4, %v4263_v37  ;;  %v5698_v17 = vadd.f32 %v5697_v14, %v5696_v5  ;;  %v5720_v16 = vadd.f32 %v5719_v10, %v5718_v13 }
 0x376   :  { %v4607_v23 = vadd.f32 %v5717_v8, %v4435_v11  ;;  %v4436_v24 = vadd.f32 %v5698_v17, %v4264_v39 }
 0x378   :  { %v4608_v7 = vadd.f32 %v5720_v16, %v4436_v24  ;;  %v4616_v9 = vadd.f32 %v5542_v18, %v4607_v23 }
 0x37a   :  { %v4618_v20 = vmax.f32 %v4616_v9, 0.0  ;;  %v4617_v21 = vadd.f32 %v5542_v18, %v4608_v7 }
 0x37c   :  { %v4627_v22 = vmul.f32 %v5543_v19, %v4618_v20  ;;  %v4619_v25 = vmax.f32 %v4617_v21, 0.0 }
 0x37e   :  { %4629 = vadd.xlane.f32.xlu0 %v4627_v22  ;;  %v4628_v41 = vmul.f32 %v5543_v19, %v4619_v25 }
 0x382   :  { %4631 = vadd.xlane.f32.xlu0 %v4628_v41 }
 0x40b   :  { %v4630_v42 = vpop.xlane.xlu0 %4629 }
 0x40c   :  { %v4640_v45 = vadd.f32 %v5544_v34, %v4630_v42 }
 0x40e   :  { %v4642_v46 = vand.u32 2147483647, %v4640_v45  ;;  %vm4650_vm0 = vcmp.ge.f32.partialorder %v4640_v45, 0.0 }
 0x40f   :  { %v4632_v47 = vpop.xlane.xlu0 %4631 }
 0x410   :  { %v4644_v49 = vsub.f32 0.0, %v4642_v46  ;;  %v4641_v50 = vadd.f32 %v5544_v34, %v4632_v47 }
 0x412   :  { %v4646_v43 = vmul.f32 1.442695, %v4644_v49  ;;  %v4643_v44 = vand.u32 2147483647, %v4641_v50  ;;  %vm4651_vm1 = vcmp.ge.f32.partialorder %v4641_v50, 0.0 }
 0x414   :  { %6477 = vpow2.f32 %v4646_v43  ;;  %v4645_v51 = vsub.f32 0.0, %v4643_v44 }
 0x416   :  { %v4648_v52 = vmul.f32 1.442695, %v4645_v51 }
 0x418   :  { %6479 = vpow2.f32 %v4648_v52 }
 0x41e   :  { %v6478_v53 = vpop.eup %6477 }
 0x41f   :  { %v4652_v56 = vadd.f32 1.0, %v6478_v53 }
 0x421   :  { %6481 = vrcp.f32 %v4652_v56 }
 0x422   :  { %v6480_v57 = vpop.eup %6479 }
 0x423   :  { %v4653_v58 = vadd.f32 1.0, %v6480_v57 }
 0x425   :  { %6483 = vrcp.f32 %v4653_v58 }
 0x42b   :  { %v6482_v54 = vpop.eup %6481 }
 0x42c   :  { %v4658_v55 = vmul.f32 %v6482_v54, %v6478_v53 }
 0x42e   :  { %v4660_v48 = vsel %vm4650_vm0, %v6482_v54, %v4658_v55 }
 0x42f   :  { %v6484_v59 = vpop.eup %6483  ;;  %4664 = vperm.xlu1 %5978, %v4660_v48  }
 0x430   :  { %v4659_v60 = vmul.f32 %v6484_v59, %v6480_v57 }
 0x432   :  { %v4661_v61 = vsel %vm4651_vm1, %v6484_v59, %v4659_v60 }
 0x433   :  { %4669 = vperm.xlu1 %5978, %v4661_v61  }
 0x4ae   :  { %v4665_v62 = vpop.permute.xlu1 %4664 }
 0x4af   :  { %4672 = vst [vmem:[%s7946_s7] sm:$0xff] %v4665_v62 }
 0x4b2   :  { %v4670_v3 = vpop.permute.xlu1 %4669 }
 0x4b3   :  { %4673 = vst [vmem:[%s7946_s7 + $0x8] sm:$0xff] %v4670_v3 }

</bundles_post_ra>
